<compile_context>
chip_gen: v6e
topology: v6e:2x2x1
jax: 0.10.0
libtpu: 0.0.40
codegen_flags: <defaults>
</compile_context>

<pallas_src>
import functools
import math

import jax
import jax.numpy as jnp
from jax import lax
from jax.experimental import pallas as pl
from jax.experimental.pallas import tpu as pltpu

_EPS = 1e-12  # espnet LayerNorm eps


# ----------------------------- in-kernel helpers ---------------------------- #

def _layernorm_f32(x, gamma, beta):
    mean = jnp.mean(x, axis=-1, keepdims=True)
    var = jnp.mean((x - mean) ** 2, axis=-1, keepdims=True)
    return (x - mean) * lax.rsqrt(var + _EPS) * gamma + beta


def _mha_heads(q, k, v, mask, num_heads, extra_v=None):
    """Multi-head attention core on 2-D (T, D) operands; heads unrolled.

    q must already be scaled by 1/sqrt(dk).  mask is (Tq, Tk) in {0,1}.
    The softmax is computed once per head and, when `extra_v` is given, applied
    to both `v` and `extra_v` (shared-softmax rmmemory path).
    """
    D = q.shape[-1]
    dk = D // num_heads
    neg = jnp.finfo(jnp.float32).min
    keep = mask > 0
    ctx_parts = []
    extra_parts = []
    for h in range(num_heads):
        lo, hi = h * dk, (h + 1) * dk
        qh, kh, vh = q[:, lo:hi], k[:, lo:hi], v[:, lo:hi]
        # q @ k^T via dot_general contracting the last dims (no explicit transpose).
        scores = lax.dot_general(qh, kh, (((1,), (1,)), ((), ())),
                                 preferred_element_type=jnp.float32)
        scores = jnp.where(keep, scores, neg)
        m = jnp.max(scores, axis=-1, keepdims=True)
        e = jnp.exp(scores - m)
        s = jnp.sum(e, axis=-1, keepdims=True)
        p = e * pl.reciprocal(s, approx=True)      # EUP reciprocal (free-ish slot)
        p = jnp.where(keep, p, 0.0)                # masked_fill(mask==0, 0)
        ctx_parts.append(jnp.dot(p, vh, preferred_element_type=jnp.float32))
        if extra_v is not None:
            extra_parts.append(jnp.dot(p, extra_v[:, lo:hi],
                                       preferred_element_type=jnp.float32))
    ctx = jnp.concatenate(ctx_parts, axis=-1)
    if extra_v is None:
        return ctx
    return ctx, jnp.concatenate(extra_parts, axis=-1)


# ----------------------------- fused block kernels --------------------------- #

def _self_block_kernel(tgt_ref, mask_ref, g_ref, b_ref, wqkv_ref, bqkv_ref,
                       wo_ref, bo_ref, o_ref, *, num_heads):
    x = tgt_ref[0].astype(jnp.float32)                       # (Tq, D) residual
    D = x.shape[-1]
    dk = D // num_heads
    scale = 1.0 / math.sqrt(dk)

    xn = _layernorm_f32(x, g_ref[...], b_ref[...])
    qkv = jnp.dot(xn, wqkv_ref[...],
                  preferred_element_type=jnp.float32) + bqkv_ref[...]
    q = qkv[:, :D] * scale                                   # fold 1/sqrt(dk) into q
    k = qkv[:, D:2 * D]
    v = qkv[:, 2 * D:]

    ctx = _mha_heads(q, k, v, mask_ref[0], num_heads)
    out = jnp.dot(ctx, wo_ref[...],
                  preferred_element_type=jnp.float32) + bo_ref[...]
    o_ref[0] = (x + out).astype(o_ref.dtype)                 # residual add fused


def _src_block_kernel(x_ref, mem_ref, rmmem_ref, mask_ref,
                      g_ref, b_ref, wq_ref, bq_ref, wk_ref, bk_ref,
                      wv_ref, bv_ref, wo_ref, bo_ref,
                      xo_ref, rmo_ref, *, num_heads):
    x = x_ref[0].astype(jnp.float32)                         # (Tq, D) residual
    mem = mem_ref[0].astype(jnp.float32)                     # (Tk, D)
    rmm = rmmem_ref[0].astype(jnp.float32)                   # (Tk, D)
    D = x.shape[-1]
    dk = D // num_heads
    scale = 1.0 / math.sqrt(dk)

    xn = _layernorm_f32(x, g_ref[...], b_ref[...])
    q = (jnp.dot(xn, wq_ref[...],
                 preferred_element_type=jnp.float32) + bq_ref[...]) * scale
    k = jnp.dot(mem, wk_ref[...],
                preferred_element_type=jnp.float32) + bk_ref[...]
    v = jnp.dot(mem, wv_ref[...],
                preferred_element_type=jnp.float32) + bv_ref[...]
    rmv = jnp.dot(rmm, wv_ref[...],
                  preferred_element_type=jnp.float32) + bv_ref[...]

    # softmax computed once, applied to both v and rmv
    ctx, rmctx = _mha_heads(q, k, v, mask_ref[0], num_heads, extra_v=rmv)

    atten = jnp.dot(ctx, wo_ref[...],
                    preferred_element_type=jnp.float32) + bo_ref[...]
    rmx = jnp.dot(rmctx, wo_ref[...],
                  preferred_element_type=jnp.float32) + bo_ref[...]
    xo_ref[0] = (x + atten).astype(xo_ref.dtype)
    rmo_ref[0] = rmx.astype(rmo_ref.dtype)


def _ff_block_kernel(x_ref, g_ref, b_ref, w1_ref, b1_ref, w2_ref, b2_ref, o_ref):
    x = x_ref[0].astype(jnp.float32)                         # (Tq, D) residual
    xn = _layernorm_f32(x, g_ref[...], b_ref[...])
    h = jnp.maximum(jnp.dot(xn, w1_ref[...],
                            preferred_element_type=jnp.float32) + b1_ref[...], 0.0)
    y = jnp.dot(h, w2_ref[...],
                preferred_element_type=jnp.float32) + b2_ref[...]
    o_ref[0] = (x + y).astype(o_ref.dtype)


# --------------------------- pallas_call wrappers ---------------------------- #

_PARALLEL = pltpu.CompilerParams(dimension_semantics=("parallel",))


def _w(shape):
    """Weight BlockSpec: same block for every grid step (stays resident in VMEM)."""
    return pl.BlockSpec(shape, lambda b: (0, 0))


def _act(T, D):
    return pl.BlockSpec((1, T, D), lambda b: (b, 0, 0))


def self_attn_block(x, mask, gamma, beta, wqkv, bqkv, wo, bo, num_heads):
    B, T, D = x.shape
    kern = functools.partial(_self_block_kernel, num_heads=num_heads)
    return pl.pallas_call(
        kern,
        out_shape=jax.ShapeDtypeStruct((B, T, D), x.dtype),
        grid=(B,),
        in_specs=[
            _act(T, D),                      # tgt
            pl.BlockSpec((1, T, T), lambda b: (b, 0, 0)),     # tgt_mask
            _w((1, D)), _w((1, D)),          # norm1 gamma/beta
            _w((D, 3 * D)), _w((1, 3 * D)),  # fused QKV weight / bias
            _w((D, D)), _w((1, D)),          # out proj
        ],
        out_specs=_act(T, D),
        compiler_params=_PARALLEL,
    )(x, mask, gamma.reshape(1, D), beta.reshape(1, D),
      wqkv, bqkv.reshape(1, 3 * D), wo, bo.reshape(1, D))


def src_attn_block(x, memory, rmmemory, mask, gamma, beta, p, num_heads):
    B, Tq, D = x.shape
    Tk = memory.shape[1]
    kern = functools.partial(_src_block_kernel, num_heads=num_heads)
    return pl.pallas_call(
        kern,
        out_shape=(jax.ShapeDtypeStruct((B, Tq, D), x.dtype),
                   jax.ShapeDtypeStruct((B, Tq, D), x.dtype)),
        grid=(B,),
        in_specs=[
            _act(Tq, D),                                      # x
            _act(Tk, D),                                      # memory
            _act(Tk, D),                                      # rmmemory
            pl.BlockSpec((1, Tq, Tk), lambda b: (b, 0, 0)),   # memory_mask
            _w((1, D)), _w((1, D)),                           # norm2 gamma/beta
            _w((D, D)), _w((1, D)),                           # wq, bq
            _w((D, D)), _w((1, D)),                           # wk, bk
            _w((D, D)), _w((1, D)),                           # wv, bv
            _w((D, D)), _w((1, D)),                           # wo, bo
        ],
        out_specs=(_act(Tq, D), _act(Tq, D)),
        compiler_params=_PARALLEL,
    )(x, memory, rmmemory, mask,
      gamma.reshape(1, D), beta.reshape(1, D),
      p["wq"], p["bq"].reshape(1, D),
      p["wk"], p["bk"].reshape(1, D),
      p["wv"], p["bv"].reshape(1, D),
      p["wo"], p["bo"].reshape(1, D))


def ff_block(x, gamma, beta, p):
    B, T, D = x.shape
    d_ff = p["w1"].shape[1]
    return pl.pallas_call(
        _ff_block_kernel,
        out_shape=jax.ShapeDtypeStruct((B, T, D), x.dtype),
        grid=(B,),
        in_specs=[
            _act(T, D),
            _w((1, D)), _w((1, D)),          # norm3 gamma/beta
            _w((D, d_ff)), _w((1, d_ff)),    # w1, b1
            _w((d_ff, D)), _w((1, D)),       # w2, b2
        ],
        out_specs=_act(T, D),
        compiler_params=_PARALLEL,
    )(x, gamma.reshape(1, D), beta.reshape(1, D),
      p["w1"], p["b1"].reshape(1, d_ff), p["w2"], p["b2"].reshape(1, D))


# --------------------------- decoder layer forward ---------------------------- #

def decoder_layer_forward(params, tgt, tgt_mask, memory, memory_mask, rmmemory, rmx,
                          num_heads):
    B, T, D = tgt.shape
    sa = params["self_attn"]

    # fuse wq|wk|wv into a single (D, 3D) weight at trace time (tiny, one-off)
    wqkv = jnp.concatenate([sa["wq"], sa["wk"], sa["wv"]], axis=1)
    bqkv = jnp.concatenate([sa["bq"], sa["bk"], sa["bv"]], axis=0)

    # --- self-attention block (normalize_before=True, concat_after=False) ---
    x = self_attn_block(tgt, tgt_mask.astype(jnp.float32),
                        params["norm1_g"], params["norm1_b"],
                        wqkv, bqkv, sa["wo"], sa["bo"], num_heads)

    # --- source-attention block (+ rmmemory via shared softmax) ---
    # TODO(synk): exact rmmemory handling of the finetuneav src_attn is unknown;
    # here the same attention weights are applied to value-projected rmmemory.
    x, rmx_out = src_attn_block(x, memory, rmmemory,
                                memory_mask.astype(jnp.float32),
                                params["norm2_g"], params["norm2_b"],
                                params["src_attn"], num_heads)

    # --- feed-forward block ---
    x = ff_block(x, params["norm3_g"], params["norm3_b"], params["ff"])

    return (x, tgt_mask, memory, memory_mask, rmmemory, rmx_out)


# ------------------------------ parameter init ------------------------------ #

def init_params(key, size, d_ff):
    def dense(k, fan_in, fan_out):
        kw, kb = jax.random.split(k)
        scale = 1.0 / jnp.sqrt(fan_in)
        w = jax.random.uniform(kw, (fan_in, fan_out), jnp.float32, -scale, scale)
        b = jax.random.uniform(kb, (fan_out,), jnp.float32, -scale, scale)
        return w, b

    keys = jax.random.split(key, 16)

    def mha_params(ks):
        wq, bq = dense(ks[0], size, size)
        wk, bk = dense(ks[1], size, size)
        wv, bv = dense(ks[2], size, size)
        wo, bo = dense(ks[3], size, size)
        return dict(wq=wq, bq=bq, wk=wk, bk=bk, wv=wv, bv=bv, wo=wo, bo=bo)

    w1, b1 = dense(keys[8], size, d_ff)
    w2, b2 = dense(keys[9], d_ff, size)

    return dict(
        norm1_g=jnp.ones((size,), jnp.float32),
        norm1_b=jnp.zeros((size,), jnp.float32),
        norm2_g=jnp.ones((size,), jnp.float32),
        norm2_b=jnp.zeros((size,), jnp.float32),
        norm3_g=jnp.ones((size,), jnp.float32),
        norm3_b=jnp.zeros((size,), jnp.float32),
        self_attn=mha_params(keys[0:4]),
        src_attn=mha_params(keys[4:8]),
        ff=dict(w1=w1, b1=b1, w2=w2, b2=b2),
    )


# ----------------------------------- main ----------------------------------- #

if __name__ == "__main__":
    B, T_OUT, T_IN, SIZE, HEADS, D_FF = 2, 8, 16, 32, 4, 64

    key = jax.random.PRNGKey(0)
    k_p, k_tgt, k_mem, k_rm = jax.random.split(key, 4)

    params = init_params(k_p, SIZE, D_FF)

    tgt = jax.random.normal(k_tgt, (B, T_OUT, SIZE), jnp.float32)
    memory = jax.random.normal(k_mem, (B, T_IN, SIZE), jnp.float32)
    rmmemory = jax.random.normal(k_rm, (B, T_IN, SIZE), jnp.float32)
    rmx = jnp.zeros((B, T_OUT, SIZE), jnp.float32)  # unused by forward path

    # causal self-attention mask (B, T_out, T_out), {0,1}
    tgt_mask = jnp.tril(jnp.ones((T_OUT, T_OUT), jnp.float32))[None].repeat(B, 0)
    # source mask (B, T_out, T_in); mask out the last 4 source frames of batch 1
    memory_mask = jnp.ones((B, T_OUT, T_IN), jnp.float32)
    memory_mask = memory_mask.at[1, :, T_IN - 4:].set(0.0)

    fwd = jax.jit(functools.partial(decoder_layer_forward, num_heads=HEADS))
    out = fwd(params, tgt, tgt_mask, memory, memory_mask, rmmemory, rmx)
    jax.block_until_ready(out)

    x_out = out[0]
    assert x_out.shape == (B, T_OUT, SIZE)
    assert out[5].shape == (B, T_OUT, SIZE)
    assert bool(jnp.all(jnp.isfinite(x_out)))
    assert bool(jnp.all(jnp.isfinite(out[5])))
    print("KERNEL_OK")
</pallas_src>

<mosaic_0001>
module attributes {stable_mosaic.version = 11 : i64} {
  func.func @_src_block_kernel(%arg0: i32, %arg1: memref<1x8x32xf32, #tpu.memory_space<vmem>>, %arg2: memref<1x16x32xf32, #tpu.memory_space<vmem>>, %arg3: memref<1x16x32xf32, #tpu.memory_space<vmem>>, %arg4: memref<1x8x16xf32, #tpu.memory_space<vmem>>, %arg5: memref<1x32xf32, #tpu.memory_space<vmem>>, %arg6: memref<1x32xf32, #tpu.memory_space<vmem>>, %arg7: memref<32x32xf32, #tpu.memory_space<vmem>>, %arg8: memref<1x32xf32, #tpu.memory_space<vmem>>, %arg9: memref<32x32xf32, #tpu.memory_space<vmem>>, %arg10: memref<1x32xf32, #tpu.memory_space<vmem>>, %arg11: memref<32x32xf32, #tpu.memory_space<vmem>>, %arg12: memref<1x32xf32, #tpu.memory_space<vmem>>, %arg13: memref<32x32xf32, #tpu.memory_space<vmem>>, %arg14: memref<1x32xf32, #tpu.memory_space<vmem>>, %arg15: memref<1x8x32xf32, #tpu.memory_space<vmem>>, %arg16: memref<1x8x32xf32, #tpu.memory_space<vmem>>) attributes {dimension_semantics = [#tpu.dimension_semantics<parallel>], iteration_bounds = array<i64: 2>, scalar_prefetch = 0 : i64, scratch_operands = 0 : i64, tpu.core_type = #tpu.core_type<tc>, window_params = [{transform_indices = @transform_0, window_bounds = array<i64: 1, 8, 32>}, {transform_indices = @transform_1, window_bounds = array<i64: 1, 16, 32>}, {transform_indices = @transform_2, window_bounds = array<i64: 1, 16, 32>}, {transform_indices = @transform_3, window_bounds = array<i64: 1, 8, 16>}, {pipeline_mode = #tpu.pipeline_mode<synchronous>, transform_indices = @transform_4, window_bounds = array<i64: 1, 32>}, {pipeline_mode = #tpu.pipeline_mode<synchronous>, transform_indices = @transform_5, window_bounds = array<i64: 1, 32>}, {pipeline_mode = #tpu.pipeline_mode<synchronous>, transform_indices = @transform_6, window_bounds = array<i64: 32, 32>}, {pipeline_mode = #tpu.pipeline_mode<synchronous>, transform_indices = @transform_7, window_bounds = array<i64: 1, 32>}, {pipeline_mode = #tpu.pipeline_mode<synchronous>, transform_indices = @transform_8, window_bounds = array<i64: 32, 32>}, {pipeline_mode = #tpu.pipeline_mode<synchronous>, transform_indices = @transform_9, window_bounds = array<i64: 1, 32>}, {pipeline_mode = #tpu.pipeline_mode<synchronous>, transform_indices = @transform_10, window_bounds = array<i64: 32, 32>}, {pipeline_mode = #tpu.pipeline_mode<synchronous>, transform_indices = @transform_11, window_bounds = array<i64: 1, 32>}, {pipeline_mode = #tpu.pipeline_mode<synchronous>, transform_indices = @transform_12, window_bounds = array<i64: 32, 32>}, {pipeline_mode = #tpu.pipeline_mode<synchronous>, transform_indices = @transform_13, window_bounds = array<i64: 1, 32>}, {transform_indices = @transform_14, window_bounds = array<i64: 1, 8, 32>}, {transform_indices = @transform_15, window_bounds = array<i64: 1, 8, 32>}]} {
    %c0 = arith.constant 0 : index
    %c0_0 = arith.constant 0 : index
    %c0_1 = arith.constant 0 : index
    %0 = vector.load %arg1[%c0, %c0_0, %c0_1] : memref<1x8x32xf32, #tpu.memory_space<vmem>>, vector<1x8x32xf32>
    %1 = vector.shape_cast %0 : vector<1x8x32xf32> to vector<8x32xf32>
    %c0_2 = arith.constant 0 : index
    %c0_3 = arith.constant 0 : index
    %c0_4 = arith.constant 0 : index
    %2 = vector.load %arg2[%c0_2, %c0_3, %c0_4] : memref<1x16x32xf32, #tpu.memory_space<vmem>>, vector<1x16x32xf32>
    %3 = vector.shape_cast %2 : vector<1x16x32xf32> to vector<16x32xf32>
    %c0_5 = arith.constant 0 : index
    %c0_6 = arith.constant 0 : index
    %c0_7 = arith.constant 0 : index
    %4 = vector.load %arg3[%c0_5, %c0_6, %c0_7] : memref<1x16x32xf32, #tpu.memory_space<vmem>>, vector<1x16x32xf32>
    %5 = vector.shape_cast %4 : vector<1x16x32xf32> to vector<16x32xf32>
    %c0_8 = arith.constant 0 : index
    %c0_9 = arith.constant 0 : index
    %6 = vector.load %arg5[%c0_8, %c0_9] : memref<1x32xf32, #tpu.memory_space<vmem>>, vector<1x32xf32>
    %c0_10 = arith.constant 0 : index
    %c0_11 = arith.constant 0 : index
    %7 = vector.load %arg6[%c0_10, %c0_11] : memref<1x32xf32, #tpu.memory_space<vmem>>, vector<1x32xf32>
    %cst = arith.constant dense<0.000000e+00> : vector<8xf32>
    %8 = vector.multi_reduction <add>, %1, %cst [1] : vector<8x32xf32> to vector<8xf32>
    %9 = vector.shape_cast %8 : vector<8xf32> to vector<8x1xf32>
    %cst_12 = arith.constant 3.200000e+01 : f32
    %10 = vector.broadcast %cst_12 : f32 to vector<8x1xf32>
    %11 = arith.divf %9, %10 : vector<8x1xf32>
    %12 = vector.broadcast %11 : vector<8x1xf32> to vector<8x32xf32>
    %13 = arith.subf %1, %12 : vector<8x32xf32>
    %14 = arith.mulf %13, %13 : vector<8x32xf32>
    %cst_13 = arith.constant dense<0.000000e+00> : vector<8xf32>
    %15 = vector.multi_reduction <add>, %14, %cst_13 [1] : vector<8x32xf32> to vector<8xf32>
    %16 = vector.shape_cast %15 : vector<8xf32> to vector<8x1xf32>
    %cst_14 = arith.constant 3.200000e+01 : f32
    %17 = vector.broadcast %cst_14 : f32 to vector<8x1xf32>
    %18 = arith.divf %16, %17 : vector<8x1xf32>
    %19 = vector.broadcast %11 : vector<8x1xf32> to vector<8x32xf32>
    %20 = arith.subf %1, %19 : vector<8x32xf32>
    %cst_15 = arith.constant 9.99999996E-13 : f32
    %21 = vector.broadcast %cst_15 : f32 to vector<8x1xf32>
    %22 = arith.addf %18, %21 : vector<8x1xf32>
    %23 = math.rsqrt %22 : vector<8x1xf32>
    %24 = vector.broadcast %23 : vector<8x1xf32> to vector<8x32xf32>
    %25 = arith.mulf %20, %24 : vector<8x32xf32>
    %26 = vector.broadcast %6 : vector<1x32xf32> to vector<8x32xf32>
    %27 = arith.mulf %25, %26 : vector<8x32xf32>
    %28 = vector.broadcast %7 : vector<1x32xf32> to vector<8x32xf32>
    %29 = arith.addf %27, %28 : vector<8x32xf32>
    %c0_16 = arith.constant 0 : index
    %c0_17 = arith.constant 0 : index
    %30 = vector.load %arg7[%c0_16, %c0_17] : memref<32x32xf32, #tpu.memory_space<vmem>>, vector<32x32xf32>
    %cst_18 = arith.constant dense<0.000000e+00> : vector<8x32xf32>
    %31 = tpu.matmul %29, %30, %cst_18 {dimension_numbers = #tpu.dot_dimension_numbers<[1], [0], [0], [1], [0, 0, 1, 1], [], []>} : vector<8x32xf32>, vector<32x32xf32>, vector<8x32xf32> -> vector<8x32xf32>
    %c0_19 = arith.constant 0 : index
    %c0_20 = arith.constant 0 : index
    %32 = vector.load %arg8[%c0_19, %c0_20] : memref<1x32xf32, #tpu.memory_space<vmem>>, vector<1x32xf32>
    %33 = vector.broadcast %32 : vector<1x32xf32> to vector<8x32xf32>
    %34 = arith.addf %31, %33 : vector<8x32xf32>
    %cst_21 = arith.constant 0.353553385 : f32
    %35 = vector.broadcast %cst_21 : f32 to vector<8x32xf32>
    %36 = arith.mulf %34, %35 : vector<8x32xf32>
    %c0_22 = arith.constant 0 : index
    %c0_23 = arith.constant 0 : index
    %37 = vector.load %arg9[%c0_22, %c0_23] : memref<32x32xf32, #tpu.memory_space<vmem>>, vector<32x32xf32>
    %cst_24 = arith.constant dense<0.000000e+00> : vector<16x32xf32>
    %38 = tpu.matmul %3, %37, %cst_24 {dimension_numbers = #tpu.dot_dimension_numbers<[1], [0], [0], [1], [0, 0, 1, 1], [], []>} : vector<16x32xf32>, vector<32x32xf32>, vector<16x32xf32> -> vector<16x32xf32>
    %c0_25 = arith.constant 0 : index
    %c0_26 = arith.constant 0 : index
    %39 = vector.load %arg10[%c0_25, %c0_26] : memref<1x32xf32, #tpu.memory_space<vmem>>, vector<1x32xf32>
    %40 = vector.broadcast %39 : vector<1x32xf32> to vector<16x32xf32>
    %41 = arith.addf %38, %40 : vector<16x32xf32>
    %c0_27 = arith.constant 0 : index
    %c0_28 = arith.constant 0 : index
    %42 = vector.load %arg11[%c0_27, %c0_28] : memref<32x32xf32, #tpu.memory_space<vmem>>, vector<32x32xf32>
    %cst_29 = arith.constant dense<0.000000e+00> : vector<16x32xf32>
    %43 = tpu.matmul %3, %42, %cst_29 {dimension_numbers = #tpu.dot_dimension_numbers<[1], [0], [0], [1], [0, 0, 1, 1], [], []>} : vector<16x32xf32>, vector<32x32xf32>, vector<16x32xf32> -> vector<16x32xf32>
    %c0_30 = arith.constant 0 : index
    %c0_31 = arith.constant 0 : index
    %44 = vector.load %arg12[%c0_30, %c0_31] : memref<1x32xf32, #tpu.memory_space<vmem>>, vector<1x32xf32>
    %45 = vector.broadcast %44 : vector<1x32xf32> to vector<16x32xf32>
    %46 = arith.addf %43, %45 : vector<16x32xf32>
    %c0_32 = arith.constant 0 : index
    %c0_33 = arith.constant 0 : index
    %47 = vector.load %arg11[%c0_32, %c0_33] : memref<32x32xf32, #tpu.memory_space<vmem>>, vector<32x32xf32>
    %cst_34 = arith.constant dense<0.000000e+00> : vector<16x32xf32>
    %48 = tpu.matmul %5, %47, %cst_34 {dimension_numbers = #tpu.dot_dimension_numbers<[1], [0], [0], [1], [0, 0, 1, 1], [], []>} : vector<16x32xf32>, vector<32x32xf32>, vector<16x32xf32> -> vector<16x32xf32>
    %c0_35 = arith.constant 0 : index
    %c0_36 = arith.constant 0 : index
    %49 = vector.load %arg12[%c0_35, %c0_36] : memref<1x32xf32, #tpu.memory_space<vmem>>, vector<1x32xf32>
    %50 = vector.broadcast %49 : vector<1x32xf32> to vector<16x32xf32>
    %51 = arith.addf %48, %50 : vector<16x32xf32>
    %c0_37 = arith.constant 0 : index
    %c0_38 = arith.constant 0 : index
    %c0_39 = arith.constant 0 : index
    %52 = vector.load %arg4[%c0_37, %c0_38, %c0_39] : memref<1x8x16xf32, #tpu.memory_space<vmem>>, vector<1x8x16xf32>
    %53 = vector.shape_cast %52 : vector<1x8x16xf32> to vector<8x16xf32>
    %cst_40 = arith.constant 0.000000e+00 : f32
    %54 = vector.broadcast %cst_40 : f32 to vector<8x16xf32>
    %55 = arith.cmpf ogt, %53, %54 : vector<8x16xf32>
    %56 = vector.extract_strided_slice %36 {offsets = [0, 0], sizes = [8, 8], strides = [1, 1]} : vector<8x32xf32> to vector<8x8xf32>
    %57 = vector.extract_strided_slice %41 {offsets = [0, 0], sizes = [16, 8], strides = [1, 1]} : vector<16x32xf32> to vector<16x8xf32>
    %58 = vector.extract_strided_slice %46 {offsets = [0, 0], sizes = [16, 8], strides = [1, 1]} : vector<16x32xf32> to vector<16x8xf32>
    %cst_41 = arith.constant dense<0.000000e+00> : vector<8x16xf32>
    %59 = tpu.matmul %56, %57, %cst_41 {dimension_numbers = #tpu.dot_dimension_numbers<[1], [1], [0], [0], [0, 0, 1, 0], [], []>} : vector<8x8xf32>, vector<16x8xf32>, vector<8x16xf32> -> vector<8x16xf32>
    %cst_42 = arith.constant -3.40282347E+38 : f32
    %60 = vector.broadcast %cst_42 : f32 to vector<8x16xf32>
    %61 = arith.select %55, %59, %60 : vector<8x16xi1>, vector<8x16xf32>
    %cst_43 = arith.constant dense<0xFF800000> : vector<8xf32>
    %62 = vector.multi_reduction <maximumf>, %61, %cst_43 [1] : vector<8x16xf32> to vector<8xf32>
    %63 = vector.shape_cast %62 : vector<8xf32> to vector<8x1xf32>
    %64 = vector.broadcast %63 : vector<8x1xf32> to vector<8x16xf32>
    %65 = arith.subf %61, %64 : vector<8x16xf32>
    %66 = math.exp %65 : vector<8x16xf32>
    %cst_44 = arith.constant dense<0.000000e+00> : vector<8xf32>
    %67 = vector.multi_reduction <add>, %66, %cst_44 [1] : vector<8x16xf32> to vector<8xf32>
    %68 = vector.shape_cast %67 : vector<8xf32> to vector<8x1xf32>
    %69 = tpu.reciprocal %68 {approx = true} : vector<8x1xf32> -> vector<8x1xf32>
    %70 = vector.broadcast %69 : vector<8x1xf32> to vector<8x16xf32>
    %71 = arith.mulf %66, %70 : vector<8x16xf32>
    %cst_45 = arith.constant 0.000000e+00 : f32
    %72 = vector.broadcast %cst_45 : f32 to vector<8x16xf32>
    %73 = arith.select %55, %71, %72 : vector<8x16xi1>, vector<8x16xf32>
    %cst_46 = arith.constant dense<0.000000e+00> : vector<8x8xf32>
    %74 = tpu.matmul %73, %58, %cst_46 {dimension_numbers = #tpu.dot_dimension_numbers<[1], [0], [0], [1], [0, 0, 1, 1], [], []>} : vector<8x16xf32>, vector<16x8xf32>, vector<8x8xf32> -> vector<8x8xf32>
    %75 = vector.extract_strided_slice %51 {offsets = [0, 0], sizes = [16, 8], strides = [1, 1]} : vector<16x32xf32> to vector<16x8xf32>
    %cst_47 = arith.constant dense<0.000000e+00> : vector<8x8xf32>
    %76 = tpu.matmul %73, %75, %cst_47 {dimension_numbers = #tpu.dot_dimension_numbers<[1], [0], [0], [1], [0, 0, 1, 1], [], []>} : vector<8x16xf32>, vector<16x8xf32>, vector<8x8xf32> -> vector<8x8xf32>
    %77 = vector.extract_strided_slice %36 {offsets = [0, 8], sizes = [8, 8], strides = [1, 1]} : vector<8x32xf32> to vector<8x8xf32>
    %78 = vector.extract_strided_slice %41 {offsets = [0, 8], sizes = [16, 8], strides = [1, 1]} : vector<16x32xf32> to vector<16x8xf32>
    %79 = vector.extract_strided_slice %46 {offsets = [0, 8], sizes = [16, 8], strides = [1, 1]} : vector<16x32xf32> to vector<16x8xf32>
    %cst_48 = arith.constant dense<0.000000e+00> : vector<8x16xf32>
    %80 = tpu.matmul %77, %78, %cst_48 {dimension_numbers = #tpu.dot_dimension_numbers<[1], [1], [0], [0], [0, 0, 1, 0], [], []>} : vector<8x8xf32>, vector<16x8xf32>, vector<8x16xf32> -> vector<8x16xf32>
    %cst_49 = arith.constant -3.40282347E+38 : f32
    %81 = vector.broadcast %cst_49 : f32 to vector<8x16xf32>
    %82 = arith.select %55, %80, %81 : vector<8x16xi1>, vector<8x16xf32>
    %cst_50 = arith.constant dense<0xFF800000> : vector<8xf32>
    %83 = vector.multi_reduction <maximumf>, %82, %cst_50 [1] : vector<8x16xf32> to vector<8xf32>
    %84 = vector.shape_cast %83 : vector<8xf32> to vector<8x1xf32>
    %85 = vector.broadcast %84 : vector<8x1xf32> to vector<8x16xf32>
    %86 = arith.subf %82, %85 : vector<8x16xf32>
    %87 = math.exp %86 : vector<8x16xf32>
    %cst_51 = arith.constant dense<0.000000e+00> : vector<8xf32>
    %88 = vector.multi_reduction <add>, %87, %cst_51 [1] : vector<8x16xf32> to vector<8xf32>
    %89 = vector.shape_cast %88 : vector<8xf32> to vector<8x1xf32>
    %90 = tpu.reciprocal %89 {approx = true} : vector<8x1xf32> -> vector<8x1xf32>
    %91 = vector.broadcast %90 : vector<8x1xf32> to vector<8x16xf32>
    %92 = arith.mulf %87, %91 : vector<8x16xf32>
    %cst_52 = arith.constant 0.000000e+00 : f32
    %93 = vector.broadcast %cst_52 : f32 to vector<8x16xf32>
    %94 = arith.select %55, %92, %93 : vector<8x16xi1>, vector<8x16xf32>
    %cst_53 = arith.constant dense<0.000000e+00> : vector<8x8xf32>
    %95 = tpu.matmul %94, %79, %cst_53 {dimension_numbers = #tpu.dot_dimension_numbers<[1], [0], [0], [1], [0, 0, 1, 1], [], []>} : vector<8x16xf32>, vector<16x8xf32>, vector<8x8xf32> -> vector<8x8xf32>
    %96 = vector.extract_strided_slice %51 {offsets = [0, 8], sizes = [16, 8], strides = [1, 1]} : vector<16x32xf32> to vector<16x8xf32>
    %cst_54 = arith.constant dense<0.000000e+00> : vector<8x8xf32>
    %97 = tpu.matmul %94, %96, %cst_54 {dimension_numbers = #tpu.dot_dimension_numbers<[1], [0], [0], [1], [0, 0, 1, 1], [], []>} : vector<8x16xf32>, vector<16x8xf32>, vector<8x8xf32> -> vector<8x8xf32>
    %98 = vector.extract_strided_slice %36 {offsets = [0, 16], sizes = [8, 8], strides = [1, 1]} : vector<8x32xf32> to vector<8x8xf32>
    %99 = vector.extract_strided_slice %41 {offsets = [0, 16], sizes = [16, 8], strides = [1, 1]} : vector<16x32xf32> to vector<16x8xf32>
    %100 = vector.extract_strided_slice %46 {offsets = [0, 16], sizes = [16, 8], strides = [1, 1]} : vector<16x32xf32> to vector<16x8xf32>
    %cst_55 = arith.constant dense<0.000000e+00> : vector<8x16xf32>
    %101 = tpu.matmul %98, %99, %cst_55 {dimension_numbers = #tpu.dot_dimension_numbers<[1], [1], [0], [0], [0, 0, 1, 0], [], []>} : vector<8x8xf32>, vector<16x8xf32>, vector<8x16xf32> -> vector<8x16xf32>
    %cst_56 = arith.constant -3.40282347E+38 : f32
    %102 = vector.broadcast %cst_56 : f32 to vector<8x16xf32>
    %103 = arith.select %55, %101, %102 : vector<8x16xi1>, vector<8x16xf32>
    %cst_57 = arith.constant dense<0xFF800000> : vector<8xf32>
    %104 = vector.multi_reduction <maximumf>, %103, %cst_57 [1] : vector<8x16xf32> to vector<8xf32>
    %105 = vector.shape_cast %104 : vector<8xf32> to vector<8x1xf32>
    %106 = vector.broadcast %105 : vector<8x1xf32> to vector<8x16xf32>
    %107 = arith.subf %103, %106 : vector<8x16xf32>
    %108 = math.exp %107 : vector<8x16xf32>
    %cst_58 = arith.constant dense<0.000000e+00> : vector<8xf32>
    %109 = vector.multi_reduction <add>, %108, %cst_58 [1] : vector<8x16xf32> to vector<8xf32>
    %110 = vector.shape_cast %109 : vector<8xf32> to vector<8x1xf32>
    %111 = tpu.reciprocal %110 {approx = true} : vector<8x1xf32> -> vector<8x1xf32>
    %112 = vector.broadcast %111 : vector<8x1xf32> to vector<8x16xf32>
    %113 = arith.mulf %108, %112 : vector<8x16xf32>
    %cst_59 = arith.constant 0.000000e+00 : f32
    %114 = vector.broadcast %cst_59 : f32 to vector<8x16xf32>
    %115 = arith.select %55, %113, %114 : vector<8x16xi1>, vector<8x16xf32>
    %cst_60 = arith.constant dense<0.000000e+00> : vector<8x8xf32>
    %116 = tpu.matmul %115, %100, %cst_60 {dimension_numbers = #tpu.dot_dimension_numbers<[1], [0], [0], [1], [0, 0, 1, 1], [], []>} : vector<8x16xf32>, vector<16x8xf32>, vector<8x8xf32> -> vector<8x8xf32>
    %117 = vector.extract_strided_slice %51 {offsets = [0, 16], sizes = [16, 8], strides = [1, 1]} : vector<16x32xf32> to vector<16x8xf32>
    %cst_61 = arith.constant dense<0.000000e+00> : vector<8x8xf32>
    %118 = tpu.matmul %115, %117, %cst_61 {dimension_numbers = #tpu.dot_dimension_numbers<[1], [0], [0], [1], [0, 0, 1, 1], [], []>} : vector<8x16xf32>, vector<16x8xf32>, vector<8x8xf32> -> vector<8x8xf32>
    %119 = vector.extract_strided_slice %36 {offsets = [0, 24], sizes = [8, 8], strides = [1, 1]} : vector<8x32xf32> to vector<8x8xf32>
    %120 = vector.extract_strided_slice %41 {offsets = [0, 24], sizes = [16, 8], strides = [1, 1]} : vector<16x32xf32> to vector<16x8xf32>
    %121 = vector.extract_strided_slice %46 {offsets = [0, 24], sizes = [16, 8], strides = [1, 1]} : vector<16x32xf32> to vector<16x8xf32>
    %cst_62 = arith.constant dense<0.000000e+00> : vector<8x16xf32>
    %122 = tpu.matmul %119, %120, %cst_62 {dimension_numbers = #tpu.dot_dimension_numbers<[1], [1], [0], [0], [0, 0, 1, 0], [], []>} : vector<8x8xf32>, vector<16x8xf32>, vector<8x16xf32> -> vector<8x16xf32>
    %cst_63 = arith.constant -3.40282347E+38 : f32
    %123 = vector.broadcast %cst_63 : f32 to vector<8x16xf32>
    %124 = arith.select %55, %122, %123 : vector<8x16xi1>, vector<8x16xf32>
    %cst_64 = arith.constant dense<0xFF800000> : vector<8xf32>
    %125 = vector.multi_reduction <maximumf>, %124, %cst_64 [1] : vector<8x16xf32> to vector<8xf32>
    %126 = vector.shape_cast %125 : vector<8xf32> to vector<8x1xf32>
    %127 = vector.broadcast %126 : vector<8x1xf32> to vector<8x16xf32>
    %128 = arith.subf %124, %127 : vector<8x16xf32>
    %129 = math.exp %128 : vector<8x16xf32>
    %cst_65 = arith.constant dense<0.000000e+00> : vector<8xf32>
    %130 = vector.multi_reduction <add>, %129, %cst_65 [1] : vector<8x16xf32> to vector<8xf32>
    %131 = vector.shape_cast %130 : vector<8xf32> to vector<8x1xf32>
    %132 = tpu.reciprocal %131 {approx = true} : vector<8x1xf32> -> vector<8x1xf32>
    %133 = vector.broadcast %132 : vector<8x1xf32> to vector<8x16xf32>
    %134 = arith.mulf %129, %133 : vector<8x16xf32>
    %cst_66 = arith.constant 0.000000e+00 : f32
    %135 = vector.broadcast %cst_66 : f32 to vector<8x16xf32>
    %136 = arith.select %55, %134, %135 : vector<8x16xi1>, vector<8x16xf32>
    %cst_67 = arith.constant dense<0.000000e+00> : vector<8x8xf32>
    %137 = tpu.matmul %136, %121, %cst_67 {dimension_numbers = #tpu.dot_dimension_numbers<[1], [0], [0], [1], [0, 0, 1, 1], [], []>} : vector<8x16xf32>, vector<16x8xf32>, vector<8x8xf32> -> vector<8x8xf32>
    %138 = vector.extract_strided_slice %51 {offsets = [0, 24], sizes = [16, 8], strides = [1, 1]} : vector<16x32xf32> to vector<16x8xf32>
    %cst_68 = arith.constant dense<0.000000e+00> : vector<8x8xf32>
    %139 = tpu.matmul %136, %138, %cst_68 {dimension_numbers = #tpu.dot_dimension_numbers<[1], [0], [0], [1], [0, 0, 1, 1], [], []>} : vector<8x16xf32>, vector<16x8xf32>, vector<8x8xf32> -> vector<8x8xf32>
    %140 = tpu.concatenate %74, %95, %116, %137 in 1 : vector<8x8xf32>, vector<8x8xf32>, vector<8x8xf32>, vector<8x8xf32> -> vector<8x32xf32>
    %141 = tpu.concatenate %76, %97, %118, %139 in 1 : vector<8x8xf32>, vector<8x8xf32>, vector<8x8xf32>, vector<8x8xf32> -> vector<8x32xf32>
    %c0_69 = arith.constant 0 : index
    %c0_70 = arith.constant 0 : index
    %142 = vector.load %arg13[%c0_69, %c0_70] : memref<32x32xf32, #tpu.memory_space<vmem>>, vector<32x32xf32>
    %cst_71 = arith.constant dense<0.000000e+00> : vector<8x32xf32>
    %143 = tpu.matmul %140, %142, %cst_71 {dimension_numbers = #tpu.dot_dimension_numbers<[1], [0], [0], [1], [0, 0, 1, 1], [], []>} : vector<8x32xf32>, vector<32x32xf32>, vector<8x32xf32> -> vector<8x32xf32>
    %c0_72 = arith.constant 0 : index
    %c0_73 = arith.constant 0 : index
    %144 = vector.load %arg14[%c0_72, %c0_73] : memref<1x32xf32, #tpu.memory_space<vmem>>, vector<1x32xf32>
    %145 = vector.broadcast %144 : vector<1x32xf32> to vector<8x32xf32>
    %146 = arith.addf %143, %145 : vector<8x32xf32>
    %c0_74 = arith.constant 0 : index
    %c0_75 = arith.constant 0 : index
    %147 = vector.load %arg13[%c0_74, %c0_75] : memref<32x32xf32, #tpu.memory_space<vmem>>, vector<32x32xf32>
    %cst_76 = arith.constant dense<0.000000e+00> : vector<8x32xf32>
    %148 = tpu.matmul %141, %147, %cst_76 {dimension_numbers = #tpu.dot_dimension_numbers<[1], [0], [0], [1], [0, 0, 1, 1], [], []>} : vector<8x32xf32>, vector<32x32xf32>, vector<8x32xf32> -> vector<8x32xf32>
    %c0_77 = arith.constant 0 : index
    %c0_78 = arith.constant 0 : index
    %149 = vector.load %arg14[%c0_77, %c0_78] : memref<1x32xf32, #tpu.memory_space<vmem>>, vector<1x32xf32>
    %150 = vector.broadcast %149 : vector<1x32xf32> to vector<8x32xf32>
    %151 = arith.addf %148, %150 : vector<8x32xf32>
    %152 = arith.addf %1, %146 : vector<8x32xf32>
    %c0_79 = arith.constant 0 : index
    %c0_80 = arith.constant 0 : index
    %c0_81 = arith.constant 0 : index
    %153 = vector.load %arg15[%c0_79, %c0_80, %c0_81] : memref<1x8x32xf32, #tpu.memory_space<vmem>>, vector<1x8x32xf32>
    %154 = vector.shape_cast %153 : vector<1x8x32xf32> to vector<8x32xf32>
    %155 = vector.shape_cast %152 : vector<8x32xf32> to vector<1x8x32xf32>
    tpu.vector_store %arg15[%c0_79, %c0_80, %c0_81], %155 {strides = array<i32>} : memref<1x8x32xf32, #tpu.memory_space<vmem>>, vector<1x8x32xf32>,
    %c0_82 = arith.constant 0 : index
    %c0_83 = arith.constant 0 : index
    %c0_84 = arith.constant 0 : index
    %156 = vector.load %arg16[%c0_82, %c0_83, %c0_84] : memref<1x8x32xf32, #tpu.memory_space<vmem>>, vector<1x8x32xf32>
    %157 = vector.shape_cast %156 : vector<1x8x32xf32> to vector<8x32xf32>
    %158 = vector.shape_cast %151 : vector<8x32xf32> to vector<1x8x32xf32>
    tpu.vector_store %arg16[%c0_82, %c0_83, %c0_84], %158 {strides = array<i32>} : memref<1x8x32xf32, #tpu.memory_space<vmem>>, vector<1x8x32xf32>,
    return
  }
  func.func @transform_0(%arg0: i32) -> (i32, i32, i32) {
    %c0_i32 = arith.constant 0 : i32
    %c0_i32_0 = arith.constant 0 : i32
    %c0_i32_1 = arith.constant 0 : i32
    return %arg0, %c0_i32, %c0_i32_0 : i32, i32, i32
  }
  func.func @transform_1(%arg0: i32) -> (i32, i32, i32) {
    %c0_i32 = arith.constant 0 : i32
    %c0_i32_0 = arith.constant 0 : i32
    %c0_i32_1 = arith.constant 0 : i32
    return %arg0, %c0_i32, %c0_i32_0 : i32, i32, i32
  }
  func.func @transform_2(%arg0: i32) -> (i32, i32, i32) {
    %c0_i32 = arith.constant 0 : i32
    %c0_i32_0 = arith.constant 0 : i32
    %c0_i32_1 = arith.constant 0 : i32
    return %arg0, %c0_i32, %c0_i32_0 : i32, i32, i32
  }
  func.func @transform_3(%arg0: i32) -> (i32, i32, i32) {
    %c0_i32 = arith.constant 0 : i32
    %c0_i32_0 = arith.constant 0 : i32
    %c0_i32_1 = arith.constant 0 : i32
    return %arg0, %c0_i32, %c0_i32_0 : i32, i32, i32
  }
  func.func @transform_4(%arg0: i32) -> (i32, i32) {
    %c0_i32 = arith.constant 0 : i32
    %c0_i32_0 = arith.constant 0 : i32
    %c0_i32_1 = arith.constant 0 : i32
    return %c0_i32, %c0_i32_0 : i32, i32
  }
  func.func @transform_5(%arg0: i32) -> (i32, i32) {
    %c0_i32 = arith.constant 0 : i32
    %c0_i32_0 = arith.constant 0 : i32
    %c0_i32_1 = arith.constant 0 : i32
    return %c0_i32, %c0_i32_0 : i32, i32
  }
  func.func @transform_6(%arg0: i32) -> (i32, i32) {
    %c0_i32 = arith.constant 0 : i32
    %c0_i32_0 = arith.constant 0 : i32
    %c0_i32_1 = arith.constant 0 : i32
    return %c0_i32, %c0_i32_0 : i32, i32
  }
  func.func @transform_7(%arg0: i32) -> (i32, i32) {
    %c0_i32 = arith.constant 0 : i32
    %c0_i32_0 = arith.constant 0 : i32
    %c0_i32_1 = arith.constant 0 : i32
    return %c0_i32, %c0_i32_0 : i32, i32
  }
  func.func @transform_8(%arg0: i32) -> (i32, i32) {
    %c0_i32 = arith.constant 0 : i32
    %c0_i32_0 = arith.constant 0 : i32
    %c0_i32_1 = arith.constant 0 : i32
    return %c0_i32, %c0_i32_0 : i32, i32
  }
  func.func @transform_9(%arg0: i32) -> (i32, i32) {
    %c0_i32 = arith.constant 0 : i32
    %c0_i32_0 = arith.constant 0 : i32
    %c0_i32_1 = arith.constant 0 : i32
    return %c0_i32, %c0_i32_0 : i32, i32
  }
  func.func @transform_10(%arg0: i32) -> (i32, i32) {
    %c0_i32 = arith.constant 0 : i32
    %c0_i32_0 = arith.constant 0 : i32
    %c0_i32_1 = arith.constant 0 : i32
    return %c0_i32, %c0_i32_0 : i32, i32
  }
  func.func @transform_11(%arg0: i32) -> (i32, i32) {
    %c0_i32 = arith.constant 0 : i32
    %c0_i32_0 = arith.constant 0 : i32
    %c0_i32_1 = arith.constant 0 : i32
    return %c0_i32, %c0_i32_0 : i32, i32
  }
  func.func @transform_12(%arg0: i32) -> (i32, i32) {
    %c0_i32 = arith.constant 0 : i32
    %c0_i32_0 = arith.constant 0 : i32
    %c0_i32_1 = arith.constant 0 : i32
    return %c0_i32, %c0_i32_0 : i32, i32
  }
  func.func @transform_13(%arg0: i32) -> (i32, i32) {
    %c0_i32 = arith.constant 0 : i32
    %c0_i32_0 = arith.constant 0 : i32
    %c0_i32_1 = arith.constant 0 : i32
    return %c0_i32, %c0_i32_0 : i32, i32
  }
  func.func @transform_14(%arg0: i32) -> (i32, i32, i32) {
    %c0_i32 = arith.constant 0 : i32
    %c0_i32_0 = arith.constant 0 : i32
    %c0_i32_1 = arith.constant 0 : i32
    return %arg0, %c0_i32, %c0_i32_0 : i32, i32, i32
  }
  func.func @transform_15(%arg0: i32) -> (i32, i32, i32) {
    %c0_i32 = arith.constant 0 : i32
    %c0_i32_0 = arith.constant 0 : i32
    %c0_i32_1 = arith.constant 0 : i32
    return %arg0, %c0_i32, %c0_i32_0 : i32, i32, i32
  }
}

module attributes {stable_mosaic.version = 11 : i64} {
  func.func @_self_block_kernel(%arg0: i32, %arg1: memref<1x8x32xf32, #tpu.memory_space<vmem>>, %arg2: memref<1x8x8xf32, #tpu.memory_space<vmem>>, %arg3: memref<1x32xf32, #tpu.memory_space<vmem>>, %arg4: memref<1x32xf32, #tpu.memory_space<vmem>>, %arg5: memref<32x96xf32, #tpu.memory_space<vmem>>, %arg6: memref<1x96xf32, #tpu.memory_space<vmem>>, %arg7: memref<32x32xf32, #tpu.memory_space<vmem>>, %arg8: memref<1x32xf32, #tpu.memory_space<vmem>>, %arg9: memref<1x8x32xf32, #tpu.memory_space<vmem>>) attributes {dimension_semantics = [#tpu.dimension_semantics<parallel>], iteration_bounds = array<i64: 2>, scalar_prefetch = 0 : i64, scratch_operands = 0 : i64, tpu.core_type = #tpu.core_type<tc>, window_params = [{transform_indices = @transform_0, window_bounds = array<i64: 1, 8, 32>}, {transform_indices = @transform_1, window_bounds = array<i64: 1, 8, 8>}, {pipeline_mode = #tpu.pipeline_mode<synchronous>, transform_indices = @transform_2, window_bounds = array<i64: 1, 32>}, {pipeline_mode = #tpu.pipeline_mode<synchronous>, transform_indices = @transform_3, window_bounds = array<i64: 1, 32>}, {pipeline_mode = #tpu.pipeline_mode<synchronous>, transform_indices = @transform_4, window_bounds = array<i64: 32, 96>}, {pipeline_mode = #tpu.pipeline_mode<synchronous>, transform_indices = @transform_5, window_bounds = array<i64: 1, 96>}, {pipeline_mode = #tpu.pipeline_mode<synchronous>, transform_indices = @transform_6, window_bounds = array<i64: 32, 32>}, {pipeline_mode = #tpu.pipeline_mode<synchronous>, transform_indices = @transform_7, window_bounds = array<i64: 1, 32>}, {transform_indices = @transform_8, window_bounds = array<i64: 1, 8, 32>}]} {
    %c0 = arith.constant 0 : index
    %c0_0 = arith.constant 0 : index
    %c0_1 = arith.constant 0 : index
    %0 = vector.load %arg1[%c0, %c0_0, %c0_1] : memref<1x8x32xf32, #tpu.memory_space<vmem>>, vector<1x8x32xf32>
    %1 = vector.shape_cast %0 : vector<1x8x32xf32> to vector<8x32xf32>
    %c0_2 = arith.constant 0 : index
    %c0_3 = arith.constant 0 : index
    %2 = vector.load %arg3[%c0_2, %c0_3] : memref<1x32xf32, #tpu.memory_space<vmem>>, vector<1x32xf32>
    %c0_4 = arith.constant 0 : index
    %c0_5 = arith.constant 0 : index
    %3 = vector.load %arg4[%c0_4, %c0_5] : memref<1x32xf32, #tpu.memory_space<vmem>>, vector<1x32xf32>
    %cst = arith.constant dense<0.000000e+00> : vector<8xf32>
    %4 = vector.multi_reduction <add>, %1, %cst [1] : vector<8x32xf32> to vector<8xf32>
    %5 = vector.shape_cast %4 : vector<8xf32> to vector<8x1xf32>
    %cst_6 = arith.constant 3.200000e+01 : f32
    %6 = vector.broadcast %cst_6 : f32 to vector<8x1xf32>
    %7 = arith.divf %5, %6 : vector<8x1xf32>
    %8 = vector.broadcast %7 : vector<8x1xf32> to vector<8x32xf32>
    %9 = arith.subf %1, %8 : vector<8x32xf32>
    %10 = arith.mulf %9, %9 : vector<8x32xf32>
    %cst_7 = arith.constant dense<0.000000e+00> : vector<8xf32>
    %11 = vector.multi_reduction <add>, %10, %cst_7 [1] : vector<8x32xf32> to vector<8xf32>
    %12 = vector.shape_cast %11 : vector<8xf32> to vector<8x1xf32>
    %cst_8 = arith.constant 3.200000e+01 : f32
    %13 = vector.broadcast %cst_8 : f32 to vector<8x1xf32>
    %14 = arith.divf %12, %13 : vector<8x1xf32>
    %15 = vector.broadcast %7 : vector<8x1xf32> to vector<8x32xf32>
    %16 = arith.subf %1, %15 : vector<8x32xf32>
    %cst_9 = arith.constant 9.99999996E-13 : f32
    %17 = vector.broadcast %cst_9 : f32 to vector<8x1xf32>
    %18 = arith.addf %14, %17 : vector<8x1xf32>
    %19 = math.rsqrt %18 : vector<8x1xf32>
    %20 = vector.broadcast %19 : vector<8x1xf32> to vector<8x32xf32>
    %21 = arith.mulf %16, %20 : vector<8x32xf32>
    %22 = vector.broadcast %2 : vector<1x32xf32> to vector<8x32xf32>
    %23 = arith.mulf %21, %22 : vector<8x32xf32>
    %24 = vector.broadcast %3 : vector<1x32xf32> to vector<8x32xf32>
    %25 = arith.addf %23, %24 : vector<8x32xf32>
    %c0_10 = arith.constant 0 : index
    %c0_11 = arith.constant 0 : index
    %26 = vector.load %arg5[%c0_10, %c0_11] : memref<32x96xf32, #tpu.memory_space<vmem>>, vector<32x96xf32>
    %cst_12 = arith.constant dense<0.000000e+00> : vector<8x96xf32>
    %27 = tpu.matmul %25, %26, %cst_12 {dimension_numbers = #tpu.dot_dimension_numbers<[1], [0], [0], [1], [0, 0, 1, 1], [], []>} : vector<8x32xf32>, vector<32x96xf32>, vector<8x96xf32> -> vector<8x96xf32>
    %c0_13 = arith.constant 0 : index
    %c0_14 = arith.constant 0 : index
    %28 = vector.load %arg6[%c0_13, %c0_14] : memref<1x96xf32, #tpu.memory_space<vmem>>, vector<1x96xf32>
    %29 = vector.broadcast %28 : vector<1x96xf32> to vector<8x96xf32>
    %30 = arith.addf %27, %29 : vector<8x96xf32>
    %31 = vector.extract_strided_slice %30 {offsets = [0, 0], sizes = [8, 32], strides = [1, 1]} : vector<8x96xf32> to vector<8x32xf32>
    %cst_15 = arith.constant 0.353553385 : f32
    %32 = vector.broadcast %cst_15 : f32 to vector<8x32xf32>
    %33 = arith.mulf %31, %32 : vector<8x32xf32>
    %34 = vector.extract_strided_slice %30 {offsets = [0, 32], sizes = [8, 32], strides = [1, 1]} : vector<8x96xf32> to vector<8x32xf32>
    %35 = vector.extract_strided_slice %30 {offsets = [0, 64], sizes = [8, 32], strides = [1, 1]} : vector<8x96xf32> to vector<8x32xf32>
    %c0_16 = arith.constant 0 : index
    %c0_17 = arith.constant 0 : index
    %c0_18 = arith.constant 0 : index
    %36 = vector.load %arg2[%c0_16, %c0_17, %c0_18] : memref<1x8x8xf32, #tpu.memory_space<vmem>>, vector<1x8x8xf32>
    %37 = vector.shape_cast %36 : vector<1x8x8xf32> to vector<8x8xf32>
    %cst_19 = arith.constant 0.000000e+00 : f32
    %38 = vector.broadcast %cst_19 : f32 to vector<8x8xf32>
    %39 = arith.cmpf ogt, %37, %38 : vector<8x8xf32>
    %40 = vector.extract_strided_slice %33 {offsets = [0, 0], sizes = [8, 8], strides = [1, 1]} : vector<8x32xf32> to vector<8x8xf32>
    %41 = vector.extract_strided_slice %34 {offsets = [0, 0], sizes = [8, 8], strides = [1, 1]} : vector<8x32xf32> to vector<8x8xf32>
    %42 = vector.extract_strided_slice %35 {offsets = [0, 0], sizes = [8, 8], strides = [1, 1]} : vector<8x32xf32> to vector<8x8xf32>
    %cst_20 = arith.constant dense<0.000000e+00> : vector<8x8xf32>
    %43 = tpu.matmul %40, %41, %cst_20 {dimension_numbers = #tpu.dot_dimension_numbers<[1], [1], [0], [0], [0, 0, 1, 0], [], []>} : vector<8x8xf32>, vector<8x8xf32>, vector<8x8xf32> -> vector<8x8xf32>
    %cst_21 = arith.constant -3.40282347E+38 : f32
    %44 = vector.broadcast %cst_21 : f32 to vector<8x8xf32>
    %45 = arith.select %39, %43, %44 : vector<8x8xi1>, vector<8x8xf32>
    %cst_22 = arith.constant dense<0xFF800000> : vector<8xf32>
    %46 = vector.multi_reduction <maximumf>, %45, %cst_22 [1] : vector<8x8xf32> to vector<8xf32>
    %47 = vector.shape_cast %46 : vector<8xf32> to vector<8x1xf32>
    %48 = vector.broadcast %47 : vector<8x1xf32> to vector<8x8xf32>
    %49 = arith.subf %45, %48 : vector<8x8xf32>
    %50 = math.exp %49 : vector<8x8xf32>
    %cst_23 = arith.constant dense<0.000000e+00> : vector<8xf32>
    %51 = vector.multi_reduction <add>, %50, %cst_23 [1] : vector<8x8xf32> to vector<8xf32>
    %52 = vector.shape_cast %51 : vector<8xf32> to vector<8x1xf32>
    %53 = tpu.reciprocal %52 {approx = true} : vector<8x1xf32> -> vector<8x1xf32>
    %54 = vector.broadcast %53 : vector<8x1xf32> to vector<8x8xf32>
    %55 = arith.mulf %50, %54 : vector<8x8xf32>
    %cst_24 = arith.constant 0.000000e+00 : f32
    %56 = vector.broadcast %cst_24 : f32 to vector<8x8xf32>
    %57 = arith.select %39, %55, %56 : vector<8x8xi1>, vector<8x8xf32>
    %cst_25 = arith.constant dense<0.000000e+00> : vector<8x8xf32>
    %58 = tpu.matmul %57, %42, %cst_25 {dimension_numbers = #tpu.dot_dimension_numbers<[1], [0], [0], [1], [0, 0, 1, 1], [], []>} : vector<8x8xf32>, vector<8x8xf32>, vector<8x8xf32> -> vector<8x8xf32>
    %59 = vector.extract_strided_slice %33 {offsets = [0, 8], sizes = [8, 8], strides = [1, 1]} : vector<8x32xf32> to vector<8x8xf32>
    %60 = vector.extract_strided_slice %34 {offsets = [0, 8], sizes = [8, 8], strides = [1, 1]} : vector<8x32xf32> to vector<8x8xf32>
    %61 = vector.extract_strided_slice %35 {offsets = [0, 8], sizes = [8, 8], strides = [1, 1]} : vector<8x32xf32> to vector<8x8xf32>
    %cst_26 = arith.constant dense<0.000000e+00> : vector<8x8xf32>
    %62 = tpu.matmul %59, %60, %cst_26 {dimension_numbers = #tpu.dot_dimension_numbers<[1], [1], [0], [0], [0, 0, 1, 0], [], []>} : vector<8x8xf32>, vector<8x8xf32>, vector<8x8xf32> -> vector<8x8xf32>
    %cst_27 = arith.constant -3.40282347E+38 : f32
    %63 = vector.broadcast %cst_27 : f32 to vector<8x8xf32>
    %64 = arith.select %39, %62, %63 : vector<8x8xi1>, vector<8x8xf32>
    %cst_28 = arith.constant dense<0xFF800000> : vector<8xf32>
    %65 = vector.multi_reduction <maximumf>, %64, %cst_28 [1] : vector<8x8xf32> to vector<8xf32>
    %66 = vector.shape_cast %65 : vector<8xf32> to vector<8x1xf32>
    %67 = vector.broadcast %66 : vector<8x1xf32> to vector<8x8xf32>
    %68 = arith.subf %64, %67 : vector<8x8xf32>
    %69 = math.exp %68 : vector<8x8xf32>
    %cst_29 = arith.constant dense<0.000000e+00> : vector<8xf32>
    %70 = vector.multi_reduction <add>, %69, %cst_29 [1] : vector<8x8xf32> to vector<8xf32>
    %71 = vector.shape_cast %70 : vector<8xf32> to vector<8x1xf32>
    %72 = tpu.reciprocal %71 {approx = true} : vector<8x1xf32> -> vector<8x1xf32>
    %73 = vector.broadcast %72 : vector<8x1xf32> to vector<8x8xf32>
    %74 = arith.mulf %69, %73 : vector<8x8xf32>
    %cst_30 = arith.constant 0.000000e+00 : f32
    %75 = vector.broadcast %cst_30 : f32 to vector<8x8xf32>
    %76 = arith.select %39, %74, %75 : vector<8x8xi1>, vector<8x8xf32>
    %cst_31 = arith.constant dense<0.000000e+00> : vector<8x8xf32>
    %77 = tpu.matmul %76, %61, %cst_31 {dimension_numbers = #tpu.dot_dimension_numbers<[1], [0], [0], [1], [0, 0, 1, 1], [], []>} : vector<8x8xf32>, vector<8x8xf32>, vector<8x8xf32> -> vector<8x8xf32>
    %78 = vector.extract_strided_slice %33 {offsets = [0, 16], sizes = [8, 8], strides = [1, 1]} : vector<8x32xf32> to vector<8x8xf32>
    %79 = vector.extract_strided_slice %34 {offsets = [0, 16], sizes = [8, 8], strides = [1, 1]} : vector<8x32xf32> to vector<8x8xf32>
    %80 = vector.extract_strided_slice %35 {offsets = [0, 16], sizes = [8, 8], strides = [1, 1]} : vector<8x32xf32> to vector<8x8xf32>
    %cst_32 = arith.constant dense<0.000000e+00> : vector<8x8xf32>
    %81 = tpu.matmul %78, %79, %cst_32 {dimension_numbers = #tpu.dot_dimension_numbers<[1], [1], [0], [0], [0, 0, 1, 0], [], []>} : vector<8x8xf32>, vector<8x8xf32>, vector<8x8xf32> -> vector<8x8xf32>
    %cst_33 = arith.constant -3.40282347E+38 : f32
    %82 = vector.broadcast %cst_33 : f32 to vector<8x8xf32>
    %83 = arith.select %39, %81, %82 : vector<8x8xi1>, vector<8x8xf32>
    %cst_34 = arith.constant dense<0xFF800000> : vector<8xf32>
    %84 = vector.multi_reduction <maximumf>, %83, %cst_34 [1] : vector<8x8xf32> to vector<8xf32>
    %85 = vector.shape_cast %84 : vector<8xf32> to vector<8x1xf32>
    %86 = vector.broadcast %85 : vector<8x1xf32> to vector<8x8xf32>
    %87 = arith.subf %83, %86 : vector<8x8xf32>
    %88 = math.exp %87 : vector<8x8xf32>
    %cst_35 = arith.constant dense<0.000000e+00> : vector<8xf32>
    %89 = vector.multi_reduction <add>, %88, %cst_35 [1] : vector<8x8xf32> to vector<8xf32>
    %90 = vector.shape_cast %89 : vector<8xf32> to vector<8x1xf32>
    %91 = tpu.reciprocal %90 {approx = true} : vector<8x1xf32> -> vector<8x1xf32>
    %92 = vector.broadcast %91 : vector<8x1xf32> to vector<8x8xf32>
    %93 = arith.mulf %88, %92 : vector<8x8xf32>
    %cst_36 = arith.constant 0.000000e+00 : f32
    %94 = vector.broadcast %cst_36 : f32 to vector<8x8xf32>
    %95 = arith.select %39, %93, %94 : vector<8x8xi1>, vector<8x8xf32>
    %cst_37 = arith.constant dense<0.000000e+00> : vector<8x8xf32>
    %96 = tpu.matmul %95, %80, %cst_37 {dimension_numbers = #tpu.dot_dimension_numbers<[1], [0], [0], [1], [0, 0, 1, 1], [], []>} : vector<8x8xf32>, vector<8x8xf32>, vector<8x8xf32> -> vector<8x8xf32>
    %97 = vector.extract_strided_slice %33 {offsets = [0, 24], sizes = [8, 8], strides = [1, 1]} : vector<8x32xf32> to vector<8x8xf32>
    %98 = vector.extract_strided_slice %34 {offsets = [0, 24], sizes = [8, 8], strides = [1, 1]} : vector<8x32xf32> to vector<8x8xf32>
    %99 = vector.extract_strided_slice %35 {offsets = [0, 24], sizes = [8, 8], strides = [1, 1]} : vector<8x32xf32> to vector<8x8xf32>
    %cst_38 = arith.constant dense<0.000000e+00> : vector<8x8xf32>
    %100 = tpu.matmul %97, %98, %cst_38 {dimension_numbers = #tpu.dot_dimension_numbers<[1], [1], [0], [0], [0, 0, 1, 0], [], []>} : vector<8x8xf32>, vector<8x8xf32>, vector<8x8xf32> -> vector<8x8xf32>
    %cst_39 = arith.constant -3.40282347E+38 : f32
    %101 = vector.broadcast %cst_39 : f32 to vector<8x8xf32>
    %102 = arith.select %39, %100, %101 : vector<8x8xi1>, vector<8x8xf32>
    %cst_40 = arith.constant dense<0xFF800000> : vector<8xf32>
    %103 = vector.multi_reduction <maximumf>, %102, %cst_40 [1] : vector<8x8xf32> to vector<8xf32>
    %104 = vector.shape_cast %103 : vector<8xf32> to vector<8x1xf32>
    %105 = vector.broadcast %104 : vector<8x1xf32> to vector<8x8xf32>
    %106 = arith.subf %102, %105 : vector<8x8xf32>
    %107 = math.exp %106 : vector<8x8xf32>
    %cst_41 = arith.constant dense<0.000000e+00> : vector<8xf32>
    %108 = vector.multi_reduction <add>, %107, %cst_41 [1] : vector<8x8xf32> to vector<8xf32>
    %109 = vector.shape_cast %108 : vector<8xf32> to vector<8x1xf32>
    %110 = tpu.reciprocal %109 {approx = true} : vector<8x1xf32> -> vector<8x1xf32>
    %111 = vector.broadcast %110 : vector<8x1xf32> to vector<8x8xf32>
    %112 = arith.mulf %107, %111 : vector<8x8xf32>
    %cst_42 = arith.constant 0.000000e+00 : f32
    %113 = vector.broadcast %cst_42 : f32 to vector<8x8xf32>
    %114 = arith.select %39, %112, %113 : vector<8x8xi1>, vector<8x8xf32>
    %cst_43 = arith.constant dense<0.000000e+00> : vector<8x8xf32>
    %115 = tpu.matmul %114, %99, %cst_43 {dimension_numbers = #tpu.dot_dimension_numbers<[1], [0], [0], [1], [0, 0, 1, 1], [], []>} : vector<8x8xf32>, vector<8x8xf32>, vector<8x8xf32> -> vector<8x8xf32>
    %116 = tpu.concatenate %58, %77, %96, %115 in 1 : vector<8x8xf32>, vector<8x8xf32>, vector<8x8xf32>, vector<8x8xf32> -> vector<8x32xf32>
    %c0_44 = arith.constant 0 : index
    %c0_45 = arith.constant 0 : index
    %117 = vector.load %arg7[%c0_44, %c0_45] : memref<32x32xf32, #tpu.memory_space<vmem>>, vector<32x32xf32>
    %cst_46 = arith.constant dense<0.000000e+00> : vector<8x32xf32>
    %118 = tpu.matmul %116, %117, %cst_46 {dimension_numbers = #tpu.dot_dimension_numbers<[1], [0], [0], [1], [0, 0, 1, 1], [], []>} : vector<8x32xf32>, vector<32x32xf32>, vector<8x32xf32> -> vector<8x32xf32>
    %c0_47 = arith.constant 0 : index
    %c0_48 = arith.constant 0 : index
    %119 = vector.load %arg8[%c0_47, %c0_48] : memref<1x32xf32, #tpu.memory_space<vmem>>, vector<1x32xf32>
    %120 = vector.broadcast %119 : vector<1x32xf32> to vector<8x32xf32>
    %121 = arith.addf %118, %120 : vector<8x32xf32>
    %122 = arith.addf %1, %121 : vector<8x32xf32>
    %c0_49 = arith.constant 0 : index
    %c0_50 = arith.constant 0 : index
    %c0_51 = arith.constant 0 : index
    %123 = vector.load %arg9[%c0_49, %c0_50, %c0_51] : memref<1x8x32xf32, #tpu.memory_space<vmem>>, vector<1x8x32xf32>
    %124 = vector.shape_cast %123 : vector<1x8x32xf32> to vector<8x32xf32>
    %125 = vector.shape_cast %122 : vector<8x32xf32> to vector<1x8x32xf32>
    tpu.vector_store %arg9[%c0_49, %c0_50, %c0_51], %125 {strides = array<i32>} : memref<1x8x32xf32, #tpu.memory_space<vmem>>, vector<1x8x32xf32>,
    return
  }
  func.func @transform_0(%arg0: i32) -> (i32, i32, i32) {
    %c0_i32 = arith.constant 0 : i32
    %c0_i32_0 = arith.constant 0 : i32
    %c0_i32_1 = arith.constant 0 : i32
    return %arg0, %c0_i32, %c0_i32_0 : i32, i32, i32
  }
  func.func @transform_1(%arg0: i32) -> (i32, i32, i32) {
    %c0_i32 = arith.constant 0 : i32
    %c0_i32_0 = arith.constant 0 : i32
    %c0_i32_1 = arith.constant 0 : i32
    return %arg0, %c0_i32, %c0_i32_0 : i32, i32, i32
  }
  func.func @transform_2(%arg0: i32) -> (i32, i32) {
    %c0_i32 = arith.constant 0 : i32
    %c0_i32_0 = arith.constant 0 : i32
    %c0_i32_1 = arith.constant 0 : i32
    return %c0_i32, %c0_i32_0 : i32, i32
  }
  func.func @transform_3(%arg0: i32) -> (i32, i32) {
    %c0_i32 = arith.constant 0 : i32
    %c0_i32_0 = arith.constant 0 : i32
    %c0_i32_1 = arith.constant 0 : i32
    return %c0_i32, %c0_i32_0 : i32, i32
  }
  func.func @transform_4(%arg0: i32) -> (i32, i32) {
    %c0_i32 = arith.constant 0 : i32
    %c0_i32_0 = arith.constant 0 : i32
    %c0_i32_1 = arith.constant 0 : i32
    return %c0_i32, %c0_i32_0 : i32, i32
  }
  func.func @transform_5(%arg0: i32) -> (i32, i32) {
    %c0_i32 = arith.constant 0 : i32
    %c0_i32_0 = arith.constant 0 : i32
    %c0_i32_1 = arith.constant 0 : i32
    return %c0_i32, %c0_i32_0 : i32, i32
  }
  func.func @transform_6(%arg0: i32) -> (i32, i32) {
    %c0_i32 = arith.constant 0 : i32
    %c0_i32_0 = arith.constant 0 : i32
    %c0_i32_1 = arith.constant 0 : i32
    return %c0_i32, %c0_i32_0 : i32, i32
  }
  func.func @transform_7(%arg0: i32) -> (i32, i32) {
    %c0_i32 = arith.constant 0 : i32
    %c0_i32_0 = arith.constant 0 : i32
    %c0_i32_1 = arith.constant 0 : i32
    return %c0_i32, %c0_i32_0 : i32, i32
  }
  func.func @transform_8(%arg0: i32) -> (i32, i32, i32) {
    %c0_i32 = arith.constant 0 : i32
    %c0_i32_0 = arith.constant 0 : i32
    %c0_i32_1 = arith.constant 0 : i32
    return %arg0, %c0_i32, %c0_i32_0 : i32, i32, i32
  }
}

module attributes {stable_mosaic.version = 11 : i64} {
  func.func @_ff_block_kernel(%arg0: i32, %arg1: memref<1x8x32xf32, #tpu.memory_space<vmem>>, %arg2: memref<1x32xf32, #tpu.memory_space<vmem>>, %arg3: memref<1x32xf32, #tpu.memory_space<vmem>>, %arg4: memref<32x64xf32, #tpu.memory_space<vmem>>, %arg5: memref<1x64xf32, #tpu.memory_space<vmem>>, %arg6: memref<64x32xf32, #tpu.memory_space<vmem>>, %arg7: memref<1x32xf32, #tpu.memory_space<vmem>>, %arg8: memref<1x8x32xf32, #tpu.memory_space<vmem>>) attributes {dimension_semantics = [#tpu.dimension_semantics<parallel>], iteration_bounds = array<i64: 2>, scalar_prefetch = 0 : i64, scratch_operands = 0 : i64, tpu.core_type = #tpu.core_type<tc>, window_params = [{transform_indices = @transform_0, window_bounds = array<i64: 1, 8, 32>}, {pipeline_mode = #tpu.pipeline_mode<synchronous>, transform_indices = @transform_1, window_bounds = array<i64: 1, 32>}, {pipeline_mode = #tpu.pipeline_mode<synchronous>, transform_indices = @transform_2, window_bounds = array<i64: 1, 32>}, {pipeline_mode = #tpu.pipeline_mode<synchronous>, transform_indices = @transform_3, window_bounds = array<i64: 32, 64>}, {pipeline_mode = #tpu.pipeline_mode<synchronous>, transform_indices = @transform_4, window_bounds = array<i64: 1, 64>}, {pipeline_mode = #tpu.pipeline_mode<synchronous>, transform_indices = @transform_5, window_bounds = array<i64: 64, 32>}, {pipeline_mode = #tpu.pipeline_mode<synchronous>, transform_indices = @transform_6, window_bounds = array<i64: 1, 32>}, {transform_indices = @transform_7, window_bounds = array<i64: 1, 8, 32>}]} {
    %c0 = arith.constant 0 : index
    %c0_0 = arith.constant 0 : index
    %c0_1 = arith.constant 0 : index
    %0 = vector.load %arg1[%c0, %c0_0, %c0_1] : memref<1x8x32xf32, #tpu.memory_space<vmem>>, vector<1x8x32xf32>
    %1 = vector.shape_cast %0 : vector<1x8x32xf32> to vector<8x32xf32>
    %c0_2 = arith.constant 0 : index
    %c0_3 = arith.constant 0 : index
    %2 = vector.load %arg2[%c0_2, %c0_3] : memref<1x32xf32, #tpu.memory_space<vmem>>, vector<1x32xf32>
    %c0_4 = arith.constant 0 : index
    %c0_5 = arith.constant 0 : index
    %3 = vector.load %arg3[%c0_4, %c0_5] : memref<1x32xf32, #tpu.memory_space<vmem>>, vector<1x32xf32>
    %cst = arith.constant dense<0.000000e+00> : vector<8xf32>
    %4 = vector.multi_reduction <add>, %1, %cst [1] : vector<8x32xf32> to vector<8xf32>
    %5 = vector.shape_cast %4 : vector<8xf32> to vector<8x1xf32>
    %cst_6 = arith.constant 3.200000e+01 : f32
    %6 = vector.broadcast %cst_6 : f32 to vector<8x1xf32>
    %7 = arith.divf %5, %6 : vector<8x1xf32>
    %8 = vector.broadcast %7 : vector<8x1xf32> to vector<8x32xf32>
    %9 = arith.subf %1, %8 : vector<8x32xf32>
    %10 = arith.mulf %9, %9 : vector<8x32xf32>
    %cst_7 = arith.constant dense<0.000000e+00> : vector<8xf32>
    %11 = vector.multi_reduction <add>, %10, %cst_7 [1] : vector<8x32xf32> to vector<8xf32>
    %12 = vector.shape_cast %11 : vector<8xf32> to vector<8x1xf32>
    %cst_8 = arith.constant 3.200000e+01 : f32
    %13 = vector.broadcast %cst_8 : f32 to vector<8x1xf32>
    %14 = arith.divf %12, %13 : vector<8x1xf32>
    %15 = vector.broadcast %7 : vector<8x1xf32> to vector<8x32xf32>
    %16 = arith.subf %1, %15 : vector<8x32xf32>
    %cst_9 = arith.constant 9.99999996E-13 : f32
    %17 = vector.broadcast %cst_9 : f32 to vector<8x1xf32>
    %18 = arith.addf %14, %17 : vector<8x1xf32>
    %19 = math.rsqrt %18 : vector<8x1xf32>
    %20 = vector.broadcast %19 : vector<8x1xf32> to vector<8x32xf32>
    %21 = arith.mulf %16, %20 : vector<8x32xf32>
    %22 = vector.broadcast %2 : vector<1x32xf32> to vector<8x32xf32>
    %23 = arith.mulf %21, %22 : vector<8x32xf32>
    %24 = vector.broadcast %3 : vector<1x32xf32> to vector<8x32xf32>
    %25 = arith.addf %23, %24 : vector<8x32xf32>
    %c0_10 = arith.constant 0 : index
    %c0_11 = arith.constant 0 : index
    %26 = vector.load %arg4[%c0_10, %c0_11] : memref<32x64xf32, #tpu.memory_space<vmem>>, vector<32x64xf32>
    %cst_12 = arith.constant dense<0.000000e+00> : vector<8x64xf32>
    %27 = tpu.matmul %25, %26, %cst_12 {dimension_numbers = #tpu.dot_dimension_numbers<[1], [0], [0], [1], [0, 0, 1, 1], [], []>} : vector<8x32xf32>, vector<32x64xf32>, vector<8x64xf32> -> vector<8x64xf32>
    %c0_13 = arith.constant 0 : index
    %c0_14 = arith.constant 0 : index
    %28 = vector.load %arg5[%c0_13, %c0_14] : memref<1x64xf32, #tpu.memory_space<vmem>>, vector<1x64xf32>
    %29 = vector.broadcast %28 : vector<1x64xf32> to vector<8x64xf32>
    %30 = arith.addf %27, %29 : vector<8x64xf32>
    %cst_15 = arith.constant 0.000000e+00 : f32
    %31 = vector.broadcast %cst_15 : f32 to vector<8x64xf32>
    %32 = arith.maximumf %30, %31 : vector<8x64xf32>
    %c0_16 = arith.constant 0 : index
    %c0_17 = arith.constant 0 : index
    %33 = vector.load %arg6[%c0_16, %c0_17] : memref<64x32xf32, #tpu.memory_space<vmem>>, vector<64x32xf32>
    %cst_18 = arith.constant dense<0.000000e+00> : vector<8x32xf32>
    %34 = tpu.matmul %32, %33, %cst_18 {dimension_numbers = #tpu.dot_dimension_numbers<[1], [0], [0], [1], [0, 0, 1, 1], [], []>} : vector<8x64xf32>, vector<64x32xf32>, vector<8x32xf32> -> vector<8x32xf32>
    %c0_19 = arith.constant 0 : index
    %c0_20 = arith.constant 0 : index
    %35 = vector.load %arg7[%c0_19, %c0_20] : memref<1x32xf32, #tpu.memory_space<vmem>>, vector<1x32xf32>
    %36 = vector.broadcast %35 : vector<1x32xf32> to vector<8x32xf32>
    %37 = arith.addf %34, %36 : vector<8x32xf32>
    %38 = arith.addf %1, %37 : vector<8x32xf32>
    %c0_21 = arith.constant 0 : index
    %c0_22 = arith.constant 0 : index
    %c0_23 = arith.constant 0 : index
    %39 = vector.load %arg8[%c0_21, %c0_22, %c0_23] : memref<1x8x32xf32, #tpu.memory_space<vmem>>, vector<1x8x32xf32>
    %40 = vector.shape_cast %39 : vector<1x8x32xf32> to vector<8x32xf32>
    %41 = vector.shape_cast %38 : vector<8x32xf32> to vector<1x8x32xf32>
    tpu.vector_store %arg8[%c0_21, %c0_22, %c0_23], %41 {strides = array<i32>} : memref<1x8x32xf32, #tpu.memory_space<vmem>>, vector<1x8x32xf32>,
    return
  }
  func.func @transform_0(%arg0: i32) -> (i32, i32, i32) {
    %c0_i32 = arith.constant 0 : i32
    %c0_i32_0 = arith.constant 0 : i32
    %c0_i32_1 = arith.constant 0 : i32
    return %arg0, %c0_i32, %c0_i32_0 : i32, i32, i32
  }
  func.func @transform_1(%arg0: i32) -> (i32, i32) {
    %c0_i32 = arith.constant 0 : i32
    %c0_i32_0 = arith.constant 0 : i32
    %c0_i32_1 = arith.constant 0 : i32
    return %c0_i32, %c0_i32_0 : i32, i32
  }
  func.func @transform_2(%arg0: i32) -> (i32, i32) {
    %c0_i32 = arith.constant 0 : i32
    %c0_i32_0 = arith.constant 0 : i32
    %c0_i32_1 = arith.constant 0 : i32
    return %c0_i32, %c0_i32_0 : i32, i32
  }
  func.func @transform_3(%arg0: i32) -> (i32, i32) {
    %c0_i32 = arith.constant 0 : i32
    %c0_i32_0 = arith.constant 0 : i32
    %c0_i32_1 = arith.constant 0 : i32
    return %c0_i32, %c0_i32_0 : i32, i32
  }
  func.func @transform_4(%arg0: i32) -> (i32, i32) {
    %c0_i32 = arith.constant 0 : i32
    %c0_i32_0 = arith.constant 0 : i32
    %c0_i32_1 = arith.constant 0 : i32
    return %c0_i32, %c0_i32_0 : i32, i32
  }
  func.func @transform_5(%arg0: i32) -> (i32, i32) {
    %c0_i32 = arith.constant 0 : i32
    %c0_i32_0 = arith.constant 0 : i32
    %c0_i32_1 = arith.constant 0 : i32
    return %c0_i32, %c0_i32_0 : i32, i32
  }
  func.func @transform_6(%arg0: i32) -> (i32, i32) {
    %c0_i32 = arith.constant 0 : i32
    %c0_i32_0 = arith.constant 0 : i32
    %c0_i32_1 = arith.constant 0 : i32
    return %c0_i32, %c0_i32_0 : i32, i32
  }
  func.func @transform_7(%arg0: i32) -> (i32, i32, i32) {
    %c0_i32 = arith.constant 0 : i32
    %c0_i32_0 = arith.constant 0 : i32
    %c0_i32_1 = arith.constant 0 : i32
    return %arg0, %c0_i32, %c0_i32_0 : i32, i32, i32
  }
}

</mosaic_0001>

<bundles_post_ra>
// kernel: decoder_layer_forward.5
= control target key start
LH: loop header
LB: loop body
LE: loop exit
PB: predicated region body
PF: predicated region fallthrough
CT: control target
= control target key end

     0   :  { %12 = vsyncpa [#allocation3], 0  ;;  %s907_s0 = inlined_call_operand.vmem [shape: f32[2,8,32], index: 0, kind: input, shape index: {}]   ;;  %s908_s1 = inlined_call_operand.vmem [shape: f32[1,32], index: 1, kind: input, shape index: {}]   ;;  %s909_s2 = inlined_call_operand.vmem [shape: f32[1,32], index: 2, kind: input, shape index: {}]   ;;  %s910_s3 = inlined_call_operand.vmem [shape: f32[32,64], index: 3, kind: input, shape index: {}]   ;;  %s911_s4 = inlined_call_operand.vmem [shape: f32[1,64], index: 4, kind: input, shape index: {}]   ;;  %s912_s5 = inlined_call_operand.vmem [shape: f32[64,32], index: 5, kind: input, shape index: {}]   ;;  %s913_s6 = inlined_call_operand.vmem [shape: f32[1,32], index: 6, kind: input, shape index: {}]   ;;  %s914_s7 = inlined_call_operand.hbm [shape: f32[2,8,32], index: 7, kind: output, shape index: {}]  }
   0x1   :  { %14 = vsyncpa [#allocation3 + $0x1], 0  ;;  %s763_s24 = smov 0   ;;  %s765_s25 = smov 0  }
   0x2   :  { %s767_s26 = smov 0   ;;  %s769_s27 = smov 0  }
   0x3 LB: > { %s784_s28 = sadd.s32 4294967295, %s718_s27   ;;  %s555_s29 = sadd.s32 4294967294, %s718_s27   ;;  %s718_s27 = sphi %s769_s27, %s920_s27   ;;  %s714_s26 = sphi %s767_s26, %s919_s26   ;;  %s710_s25 = sphi %s765_s25, %s918_s25   ;;  %s706_s24 = sphi %s763_s24, %s917_s24  }
   0x4   : > { %s788_s30 = sadd.s32 1, %s718_s27   ;;  %s179_s8 = sadd.s32 1, %s714_s26 }
   0x5   : > { %s176_s9 = ssub.s32 %s718_s27, %s788_s30  ;;  %p189_p0 = scmp.ne.s32.totalorder %s714_s26, %s710_s25 }
   0x6   : > { %p177_p1 = scmp.eq.s32.totalorder %s176_s9, 0  ;;  %p190_p2 = scmp.eq.s32.totalorder %s784_s28, 1 }
   0x7   : > { %p195_p3 = scmp.ne.s32.totalorder %s710_s25, %s706_s24  ;;  %p196_p4 = scmp.eq.s32.totalorder %s555_s29, 1 }
   0x8   : > { %s799_s10 = scalar_select %p177_p1, %s714_s26, %s179_s8  }
   0x9   : > { %p801_p5 = por %p190_p2, %p189_p0  ;;  %p805_p6 = por %p196_p4, %p195_p3 }
   0xa   : > { %p558_p7 = scmp.ge.s32.totalorder %s718_s27, 1  ;;  %p239_p8 = scmp.lt.s32.totalorder %s718_s27, 3 }
   0xc   : > { %p240_p9 = pnand %p558_p7, %p239_p8 }
   0xd   : > { %p270_p10 = scmp.lt.s32.totalorder (!%p240_p9), %s784_s28, 1  ;;  %s267_s20 = sand.u32 (!%p240_p9), 1, %s710_s25  }
   0xe   : > { %243 = sbr.rel (%p240_p9) target bundleno = 739 (0x2e3), region = 48  ;;  %s559_s21 = sshll.u32 (!%p240_p9), %s267_s20, 3 }
   0xf   : > { %s568_s29 = sshll.u32 (!%p240_p9), %s784_s28, 7  ;;  %s269_s8 = scalar_lea.vmem (!%p240_p9), [#allocation2], %s559_s21 }
  0x10   : > { %s496_s9 = sshll.u32 (!%p240_p9), %s269_s8, 4  ;;  %s494_s15 = scalar_lea.hbm (!%p240_p9), %s914_s7, %s568_s29  ;;  %s497_s9 = int_to_ptr.vmem [resolvable:$true] %s496_s9 }
  0x11   : > { %s483_s16 = scalar_lea.sflag (!%p240_p9), [#allocation3], %s267_s20 }
  0x13   : > { %s271_s13 = scalar_select %p270_p10, %s784_s28, 1  ;;  %vm277_vm0 = vcmask 261120   ;;  %v309_v7 = vld [vmem:[%s910_s3 + $0x18] sm:$0xff]  ;;  %v720_v8 = vmov 0.0   ;;  %v308_v9 = vld [vmem:[%s910_s3 + $0x10] sm:$0xff]  ;;  %vm721_vm1 = vmmov 0  }
  0x14   : > { %585 = vmatprep.subr.mxu0 %v720_v8  ;;  %593 = vmatprep.mubr.msk.f32.mxu0 %vm721_vm1, %v720_v8  ;;  %v307_v10 = vld [vmem:[%s910_s3 + $0x8] sm:$0xff]  ;;  %v306_v11 = vld [vmem:[%s910_s3] sm:$0xff]  ;;  %v398_v12 = vld [vmem:[%s912_s5 + $0x38] sm:$0xff]  ;;  %vm406_vm2 = vcmask 523264   ;;  %s722_s28 = smov [#allocation2]  }
  0x15   : > { %s560_s14 = sshll.u32 %s271_s13, 3  ;;  %586 = vmatpush3.msra.mxu0 %v309_v7  ;;  %596 = vmatprep.subr.mxu1 %v720_v8  ;;  %v397_v13 = vld [vmem:[%s912_s5 + $0x30] sm:$0xff]  ;;  %v396_v14 = vld [vmem:[%s912_s5 + $0x28] sm:$0xff]  ;;  %v395_v15 = vld [vmem:[%s912_s5 + $0x20] sm:$0xff]  ;;  %s662_s18 = sshll.u32 %s722_s28, 4  ;;  %s663_s18 = int_to_ptr.vmem [resolvable:$false] %s662_s18 }
  0x16   : > { %s273_s17 = scalar_lea.vmem %s907_s0, %s560_s14  ;;  %587 = vmatprep.subr.mxu0 %v720_v8  ;;  %612 = vmatprep.mubr.msk.f32.mxu1 %vm721_vm1, %v720_v8  ;;  %v394_v16 = vld [vmem:[%s912_s5 + $0x18] sm:$0xff]  ;;  %v561_v21 = vld [vmem:[%s908_s1] ss:$0 sm:$0xff]  ;;  %v393_v26 = vld [vmem:[%s912_s5 + $0x10] sm:$0xff]  ;;  %s664_s19 = scalar_lea.vmem %s663_s18, 256 }
  0x17   : > { %v816_v0 = vld [vmem:[%s273_s17] sm:$0xff]  ;;  %588 = vmatpush3.msra.mxu0 %v308_v9  ;;  %597 = vmatpush3.msra.mxu1 %v398_v12  ;;  %v392_v27 = vld [vmem:[%s912_s5 + $0x8] sm:$0xff]  ;;  %s658_s17 = scalar_lea.vmem %s497_s9, 128  ;;  %p665_p0 = scmp.lt.s32.totalorder %s497_s9, %s663_s18 }
  0x18   : > { %v278_v1 = vsel %vm277_vm0, %v816_v0, 0.0  ;;  %589 = vmatprep.subr.mxu0 %v720_v8  ;;  %598 = vmatprep.subr.mxu1 %v720_v8  ;;  %v562_v23 = vld [vmem:[%s909_s2] ss:$0 sm:$0xff]  ;;  %p659_p11 = scmp.ne.s32.totalorder %s497_s9, %s658_s17  ;;  %p666_p1 = scmp.lt.s32.totalorder %s664_s19, %s658_s17 }
  0x19   : > { %279 = vadd.xlane.f32.xlu0 %v278_v1  ;;  %590 = vmatpush3.msra.mxu0 %v307_v10  ;;  %v391_v28 = vld [vmem:[%s912_s5] sm:$0xff] }
  0x1a   : > { %591 = vmatprep.subr.mxu0 %v720_v8  ;;  %599 = vmatpush3.msra.mxu1 %v397_v13  ;;  %v563_v29 = vld [vmem:[%s911_s4] ss:$0 sm:$0xff]  ;;  %p660_p12 = pnand %p659_p11, %p801_p5  ;;  %p667_p2 = por %p666_p1, %p665_p0 }
  0x1b   : > { %592 = vmatpush3.msra.mxu0 %v306_v11  ;;  %600 = vmatprep.subr.mxu1 %v720_v8  ;;  %v565_v34 = vld [vmem:[%s913_s6] ss:$0 sm:$0xff] }
  0x1c   : > { %601 = vmatpush3.msra.mxu1 %v396_v14  ;;  %p661_p13 = pneg %p660_p12 }
  0x1d   : > { %602 = vmatprep.subr.mxu1 %v720_v8 }
  0x1e   : > { %603 = vmatpush3.msra.mxu1 %v395_v15  ;;  %p668_p3 = pnand %p667_p2, %p661_p13 }
  0x1f   : > { %604 = vmatprep.subr.mxu1 %v720_v8 }
  0x20   : > { %605 = vmatpush3.msra.mxu1 %v394_v16 }
  0x21   : > { %606 = vmatprep.subr.mxu1 %v720_v8 }
  0x22   : > { %607 = vmatpush3.msra.mxu1 %v393_v26 }
  0x23   : > { %608 = vmatprep.subr.mxu1 %v720_v8 }
  0x24   : > { %609 = vmatpush3.msra.mxu1 %v392_v27 }
  0x25   : > { %610 = vmatprep.subr.mxu1 %v720_v8 }
  0x26   : > { %611 = vmatpush3.msra.mxu1 %v391_v28 }
  0xa2   : > { %v280_v2 = vpop.xlane.xlu0 %279 }
  0xa3   : > { %v282_v3 = vmul.f32 0.03125, %v280_v2 }
  0xa5   : > { %v283_v4 = vsub.f32 %v816_v0, %v282_v3 }
  0xa7   : > { %v284_v5 = vmul.f32 %v283_v4, %v283_v4 }
  0xa9   : > { %v285_v6 = vsel %vm277_vm0, %v284_v5, 0.0 }
  0xaa   : > { %286 = vadd.xlane.f32.xlu0 %v285_v6 }
 0x133   : > { %v287_v17 = vpop.xlane.xlu0 %286 }
 0x134   : > { %v288_v18 = vmul.f32 0.03125, %v287_v17 }
 0x136   : > { %v289_v19 = vadd.f32 1e-12, %v288_v18 }
 0x138   : > { %656 = vrsqrt.f32 %v289_v19 }
 0x145   : > { %v657_v20 = vpop.eup %656 }
 0x146   : > { %v291_v22 = vmul.f32 %v657_v20, %v283_v4 }
 0x148   : > { %v298_v24 = vmul.f32 %v561_v21, %v291_v22 }
 0x14a   : > { %v305_v25 = vadd.f32 %v562_v23, %v298_v24 }
 0x14c   : > { %594 = vmatmul.mubr.msk.f32.vlgmr.msra.gmra.mxu0 %vm277_vm0, %v305_v25 }
 0x20c   : > { %v386_v30 = vpop.f32.mrf.mxu0 }
 0x20d   : > { %v387_v31 = vadd.f32 %v563_v29, %v386_v30 }
 0x20e   : > { %v595_v32 = vpop.f32.mrf.mxu0 }
 0x20f   : > { %v390_v33 = vmax.f32 %v387_v31, 0.0 }
 0x211   : > { %613 = vmatmul.mubr.msk.f32.vlgmr.msra.gmra.mxu1 %vm406_vm2, %v390_v33 }
 0x2d1   : > { %v476_v35 = vpop.f32.mrf.mxu1 }
 0x2d2   : > { %v477_v36 = vadd.f32 %v565_v34, %v476_v35 }
 0x2d3   : > { %v614_v37 = vpop.f32.mrf.mxu1 }
 0x2d4   : > { %v480_v38 = vadd.f32 %v477_v36, %v816_v0 }
 0x2d6   : > { %481 = vst.msk [vmem:[%s269_s8] sm:$0xff] %vm277_vm0, %v480_v38 }
 0x2d7   : > { %671 = shalt.err (!%p668_p3)
}
 0x2d8   : > { %s672_s21 = scalar_lea.hbm %s494_s15, 128  ;;  %s676_s23 = scalar_lea.hbm %s914_s7, 256 }
 0x2d9   : > { %p673_p4 = scmp.ne.s32.totalorder %s494_s15, %s672_s21  ;;  %p677_p9 = scmp.lt.s32.totalorder %s494_s15, %s914_s7 }
 0x2da   : > { %p678_p10 = scmp.lt.s32.totalorder %s676_s23, %s672_s21 }
 0x2db   : > { %p674_p7 = pnand %p673_p4, %p801_p5 }
 0x2dc   : > { %p679_p11 = por %p678_p10, %p677_p9 }
 0x2dd   : > { %p675_p8 = pneg %p674_p7 }
 0x2df   : > { %p680_p12 = pnand %p679_p11, %p675_p8 }
 0x2e1   : > { %683 = shalt.err (!%p680_p12)
}
 0x2e2   : > { %615 = dma.vmem_to_hbm [thread:$0]  (%p801_p5), %s497_s9, 128, %s494_s15, %s483_s16  }
 0x2e3 PF: > { %p621_p13 = scmp.ge.s32.totalorder %s718_s27, 2  ;;  %s508_s13 = sand.u32 1, %s706_s24  }
 0x2e4   : > { %s509_s14 = scalar_lea.sflag [#allocation3], %s508_s13 }
 0x2e5   : > { %p618_p0 = pnand %p621_p13, %p805_p6 }
 0x2e7   : > { %p619_p1 = pneg %p618_p0 }
 0x2e9   : > { %701 = dma.done.wait (%p619_p1), %s509_s14, 128  }
 0x2ea   : > { %703 = vsyncadd (%p619_p1), %s509_s14, 4294967168  ;;  %p17_p2 = scmp.ge.s32.totalorder %s788_s30, 4   ;;  %s917_s24 = smov %s710_s25 }
 0x2eb   : > { %s918_s25 = smov %s714_s26  ;;  %s919_s26 = smov %s799_s10 }
 0x2ec   : > { %s920_s27 = smov %s788_s30  ;;  %19 = sbr.rel (!%p17_p2) target bundleno = 3 (0x3), region = 83 }
 0x2f1   :  { %514 = vsyncpa [#allocation3], 1 }
 0x2f2   :  { %516 = vsyncpa [#allocation3 + $0x1], 1 }

// kernel: decoder_layer_forward.3
= control target key start
LH: loop header
LB: loop body
LE: loop exit
PB: predicated region body
PF: predicated region fallthrough
CT: control target
= control target key end

     0   :  { %s1501_s27 = smov 0   ;;  %s1662_s0 = inlined_call_operand.vmem [shape: f32[2,8,32], index: 0, kind: input, shape index: {}]   ;;  %s1663_s1 = inlined_call_operand.vmem [shape: f32[2,8,8], index: 1, kind: input, shape index: {}]   ;;  %s1664_s2 = inlined_call_operand.vmem [shape: f32[1,32], index: 2, kind: input, shape index: {}]   ;;  %s1665_s3 = inlined_call_operand.vmem [shape: f32[1,32], index: 3, kind: input, shape index: {}]   ;;  %s1666_s4 = inlined_call_operand.vmem [shape: f32[32,96], index: 4, kind: input, shape index: {}]   ;;  %s1667_s5 = inlined_call_operand.vmem [shape: f32[1,96], index: 5, kind: input, shape index: {}]   ;;  %s1668_s6 = inlined_call_operand.vmem [shape: f32[32,32], index: 6, kind: input, shape index: {}]   ;;  %s1669_s7 = inlined_call_operand.vmem [shape: f32[1,32], index: 7, kind: input, shape index: {}]   ;;  %s1670_s8 = inlined_call_operand.vmem [shape: f32[2,8,32], index: 8, kind: output, shape index: {}]  }
   0x1 LB: > { %s1274_s28 = sadd.s32 4294967295, %s1438_s27   ;;  %p1278_p0 = scmp.ge.s32.totalorder %s1438_s27, 1  ;;  %s1438_s27 = sphi %s1501_s27, %s18_s27  }
   0x2   : > { %p270_p1 = scmp.lt.s32.totalorder %s1438_s27, 3 }
   0x4   : > { %p271_p2 = pnand %p1278_p0, %p270_p1 }
   0x5   : > { %p306_p3 = scmp.lt.s32.totalorder (!%p271_p2), %s1274_s28, 1  ;;  %s1442_s25 = smov (!%p271_p2), 64  }
   0x6   : > { %274 = sbr.rel (%p271_p2) target bundleno = 2169 (0x879), region = 52  ;;  %s1443_s26 = smov (!%p271_p2), 96  }
   0x7   : > { %s1445_s11 = smov (!%p271_p2), 80   ;;  %s1446_s12 = smov (!%p271_p2), 120  }
   0x8   : > { %s1447_s13 = smov (!%p271_p2), 112   ;;  %s1448_s14 = smov (!%p271_p2), 72  }
   0x9   : > { %s1449_s15 = smov (!%p271_p2), 104   ;;  %s1450_s16 = smov (!%p271_p2), 48  }
   0xa   : > { %s1451_s17 = smov (!%p271_p2), 56   ;;  %s1452_s18 = smov (!%p271_p2), 40  }
   0xb   : > { %s1672_s28 = smov (!%p306_p3, %s1274_s28), 1  ;;  %vm321_vm0 = vcmask 261120   ;;  %v353_v7 = vld [vmem:[%s1666_s4 + $0x18] sm:$0xff]  ;;  %v1440_v8 = vmov 0.0   ;;  %v352_v9 = vld [vmem:[%s1666_s4 + $0x10] sm:$0xff]  ;;  %vm1441_vm1 = vmmov 0  }
   0xc   : > { %s1509_s29 = sshll.u32 %s1672_s28, 3  ;;  %1328 = vmatprep.subr.mxu0 %v1440_v8  ;;  %1336 = vmatprep.mubr.msk.f32.mxu0 %vm1441_vm1, %v1440_v8  ;;  %v351_v10 = vld [vmem:[%s1666_s4 + $0x8] sm:$0xff]  ;;  %v350_v11 = vld [vmem:[%s1666_s4] sm:$0xff]  ;;  %s1444_s28 = smov 88   ;;  %vm440_vm2 = vcmask 64512   ;;  %vm1119_vm4 = vcmask 130048  }
   0xd   : > { %s309_s10 = scalar_lea.vmem %s1662_s0, %s1509_s29  ;;  %1329 = vmatpush3.msra.mxu0 %v353_v7  ;;  %1339 = vmatprep.subr.mxu1 %v1440_v8  ;;  %v1282_v16 = vld [vmem:[%s1664_s2] ss:$0 sm:$0xff]  ;;  %s1454_s30 = smov 16   ;;  %vm1121_vm5 = vcmask 195584  }
   0xe   : > { %v1515_v0 = vld [vmem:[%s309_s10] sm:$0xff]  ;;  %1330 = vmatprep.subr.mxu0 %v1440_v8  ;;  %1341 = vmatprep.mubr.msk.f32.mxu1 %vm1441_vm1, %v1440_v8  ;;  %s313_s10 = scalar_lea.vmem %s1663_s1, %s1509_s29  ;;  %s1455_s9 = smov 24  }
   0xf   : > { %v322_v1 = vsel %vm321_vm0, %v1515_v0, 0.0  ;;  %1331 = vmatpush3.msra.mxu0 %v352_v9  ;;  %v1283_v18 = vld [vmem:[%s1665_s3] ss:$0 sm:$0xff] }
  0x10   : > { %323 = vadd.xlane.f32.xlu0 %v322_v1  ;;  %1332 = vmatprep.subr.mxu0 %v1440_v8  ;;  %v1284_v21 = vld [vmem:[%s1667_s5] ss:$0 sm:$0xff] }
  0x11   : > { %1333 = vmatpush3.msra.mxu0 %v351_v10  ;;  %v1571_v28 = vld [vmem:[%s313_s10] sm:$0xff] }
  0x12   : > { %1334 = vmatprep.subr.mxu0 %v1440_v8  ;;  %vm436_vm3 = vcmp.gt.f32.partialorder %v1571_v28, 0.0  ;;  %v1123_v28 = vld [vmem:[%s1668_s6] sm:$0xff] }
  0x13   : > { %1335 = vmatpush3.msra.mxu0 %v350_v11 }
  0x14   : > { %1359 = vmatprep.subr.mxu0 %v1440_v8 }
  0x99   : > { %v324_v2 = vpop.xlane.xlu0 %323 }
  0x9a   : > { %v326_v3 = vmul.f32 0.03125, %v324_v2 }
  0x9c   : > { %v327_v4 = vsub.f32 %v1515_v0, %v326_v3 }
  0x9e   : > { %v328_v5 = vmul.f32 %v327_v4, %v327_v4 }
  0xa0   : > { %v329_v6 = vsel %vm321_vm0, %v328_v5, 0.0 }
  0xa1   : > { %330 = vadd.xlane.f32.xlu0 %v329_v6 }
 0x12a   : > { %v331_v12 = vpop.xlane.xlu0 %330 }
 0x12b   : > { %v332_v13 = vmul.f32 0.03125, %v331_v12 }
 0x12d   : > { %v333_v14 = vadd.f32 1e-12, %v332_v13 }
 0x12f   : > { %1414 = vrsqrt.f32 %v333_v14 }
 0x13c   : > { %v1415_v15 = vpop.eup %1414 }
 0x13d   : > { %v335_v17 = vmul.f32 %v1415_v15, %v327_v4 }
 0x13f   : > { %v342_v19 = vmul.f32 %v1282_v16, %v335_v17 }
 0x141   : > { %v349_v20 = vadd.f32 %v1283_v18, %v342_v19 }
 0x143   : > { %1337 = vmatmul.mubr.msk.f32.vlgmr.msra.gmra.mxu0 %vm321_vm0, %v349_v20 }
 0x144   : > { %1361 = vmatprep.mubr.msk.f32.mxu0 %vm1441_vm1, %v1440_v8 }
 0x203   : > { %v430_v22 = vpop.f32.mrf.mxu0 }
 0x204   : > { %v1555_v23 = vadd.f32 %v1284_v21, %v430_v22 }
 0x205   : > { %v1338_v24 = vpop.f32.mrf.mxu0 }
 0x206   : > { %529 = vrot.lane.b32.xlu0 %v1555_v23, %s1442_s25  ;;  %438 = vrot.lane.b32.xlu1 %v1555_v23, %s1443_s26  ;;  %v434_v26 = vmul.f32 0.35355338, %v1555_v23 }
 0x20a   : > { %607 = vrot.lane.b32.xlu0 %v1555_v23, %s1444_s28  ;;  %s1453_s28 = smov 8  }
 0x278   : > { %v439_v25 = vpop.permute.xlu1 %438  ;;  %v530_v27 = vpop.permute.xlu0 %529 }
 0x279   : > { %1340 = vmatpush3.xpose.msk.msra.mxu1 %vm440_vm2, %v439_v25 }
 0x27a   : > { %1344 = vmatprep.subr.mxu1 %v1440_v8 }
 0x27c   : > { %1342 = vmatmul.mubr.msk.f32.vlgmr.msra.gmra.mxu1 %vm440_vm2, %v434_v26  ;;  %v608_v39 = vpop.permute.xlu0 %607 }
 0x27d   : > { %1345 = vmatpush3.msra.mxu1 %v530_v27  ;;  %1346 = vmatprep.mubr.msk.f32.mxu1 %vm1441_vm1, %v1440_v8 }
 0x27e   : > { %1349 = vmatprep.subr.mxu1 %v1440_v8 }
 0x33c   : > { %v512_v29 = vpop.f32.mrf.mxu1 }
 0x33d   : > { %v516_v30 = vsel %vm436_vm3, %v512_v29, -3.4028235e+38 }
 0x33e   : > { %v1343_v31 = vpop.f32.mrf.mxu1  ;;  %v517_v32 = vsel %vm440_vm2, %v516_v30, -inf }
 0x33f   : > { %518 = vmax.xlane.f32.xlu1 %v517_v32  ;;  %v1126_v31 = vld [vmem:[%s1668_s6 + $0x18] sm:$0xff]  ;;  %v1125_v32 = vld [vmem:[%s1668_s6 + $0x10] sm:$0xff] }
 0x350   : > { %774 = vrot.lane.b32.xlu1 %v1555_v23, %s1445_s11 }
 0x3c8   : > { %v519_v33 = vpop.xlane.xlu1 %518 }
 0x3c9   : > { %v520_v34 = vsub.f32 %v516_v30, %v519_v33  ;;  %v1124_v33 = vld [vmem:[%s1668_s6 + $0x8] sm:$0xff] }
 0x3cb   : > { %v521_v35 = vmul.f32 1.442695, %v520_v34 }
 0x3cc   : > { %v775_v36 = vpop.permute.xlu1 %774 }
 0x3cd   : > { %1416 = vpow2.f32 %v521_v35  ;;  %1360 = vmatpush3.xpose.msk.msra.mxu0 %vm440_vm2, %v775_v36 }
 0x3ce   : > { %1369 = vmatprep.subr.mxu0 %v1440_v8 }
 0x3da   : > { %v1417_v37 = vpop.eup %1416 }
 0x3db   : > { %v523_v38 = vsel %vm440_vm2, %v1417_v37, 0.0 }
 0x3dc   : > { %524 = vadd.xlane.f32.xlu0 %v523_v38 }
 0x3f2   : > { %605 = vrot.lane.b32.xlu0 %v434_v26, %s1446_s12 }
 0x3f6   : > { %772 = vrot.lane.b32.xlu0 %v434_v26, %s1447_s13 }
 0x3fa   : > { %941 = vrot.lane.b32.xlu0 %v1555_v23, %s1448_s14  ;;  %s317_s14 = scalar_lea.vmem %s1670_s8, %s1509_s29 }
 0x3fe   : > { %939 = vrot.lane.b32.xlu0 %v434_v26, %s1449_s15 }
 0x465   : > { %v525_v40 = vpop.xlane.xlu0 %524 }
 0x466   : > { %1418 = vrcp.f32 %v525_v40 }
 0x469   : > { %v606_v41 = vpop.permute.xlu0 %605 }
 0x46d   : > { %v773_v42 = vpop.permute.xlu0 %772 }
 0x46e   : > { %1362 = vmatmul.mubr.msk.f32.vlgmr.msra.gmra.mxu0 %vm440_vm2, %v773_v42 }
 0x46f   : > { %1371 = vmatprep.mubr.msk.f32.mxu0 %vm1441_vm1, %v1440_v8 }
 0x471   : > { %v942_v43 = vpop.permute.xlu0 %941 }
 0x472   : > { %1370 = vmatpush3.xpose.msk.msra.mxu0 %vm440_vm2, %v942_v43 }
 0x473   : > { %v1419_v44 = vpop.eup %1418  ;;  %1379 = vmatprep.subr.mxu0 %v1440_v8 }
 0x474   : > { %v527_v45 = vmul.f32 %v1419_v44, %v1417_v37 }
 0x475   : > { %v940_v46 = vpop.permute.xlu0 %939 }
 0x476   : > { %1372 = vmatmul.mubr.msk.f32.vlgmr.msra.gmra.mxu0 %vm440_vm2, %v940_v46  ;;  %v528_v47 = vsel %vm436_vm3, %v527_v45, 0.0  ;;  %v1298_v45 = vld [vmem:[%s1669_s7] ss:$0 sm:$0xff] }
 0x477   : > { %1347 = vmatmul.mubr.msk.f32.vlgmr.msra.gmra.mxu1 %vm440_vm2, %v528_v47  ;;  %1387 = vmatprep.mubr.msk.f32.mxu0 %vm1441_vm1, %v1440_v8 }
 0x478   : > { %1350 = vmatpush3.xpose.msk.msra.mxu1 %vm440_vm2, %v608_v39  ;;  %1351 = vmatprep.mubr.msk.f32.mxu1 %vm1441_vm1, %v1440_v8 }
 0x479   : > { %1354 = vmatprep.subr.mxu1 %v1440_v8  ;;  %1380 = vmatpush3.msra.mxu0 %v1126_v31 }
 0x47a   : > { %1381 = vmatprep.subr.mxu0 %v1440_v8 }
 0x47b   : > { %1352 = vmatmul.mubr.msk.f32.vlgmr.msra.gmra.mxu1 %vm440_vm2, %v606_v41  ;;  %1382 = vmatpush3.msra.mxu0 %v1125_v32 }
 0x47c   : > { %1356 = vmatprep.mubr.msk.f32.mxu1 %vm1441_vm1, %v1440_v8  ;;  %1383 = vmatprep.subr.mxu0 %v1440_v8 }
 0x47d   : > { %1384 = vmatpush3.msra.mxu0 %v1124_v33 }
 0x47e   : > { %1385 = vmatprep.subr.mxu0 %v1440_v8 }
 0x47f   : > { %1386 = vmatpush3.msra.mxu0 %v1123_v28 }
 0x52e   : > { %v846_v48 = vpop.f32.mrf.mxu0 }
 0x52f   : > { %v850_v49 = vsel %vm436_vm3, %v846_v48, -3.4028235e+38 }
 0x530   : > { %v1363_v50 = vpop.f32.mrf.mxu0  ;;  %v851_v51 = vsel %vm440_vm2, %v850_v49, -inf }
 0x531   : > { %852 = vmax.xlane.f32.xlu1 %v851_v51 }
 0x536   : > { %v1013_v52 = vpop.f32.mrf.mxu0 }
 0x537   : > { %v1603_v53 = vpop.f32.mrf.mxu1  ;;  %v1017_v60 = vsel %vm436_vm3, %v1013_v52, -3.4028235e+38 }
 0x538   : > { %v1373_v54 = vpop.f32.mrf.mxu0  ;;  %v1018_v61 = vsel %vm440_vm2, %v1017_v60, -inf }
 0x539   : > { %v1348_v55 = vpop.f32.mrf.mxu1 }
 0x53b   : > { %v679_v56 = vpop.f32.mrf.mxu1 }
 0x53c   : > { %v683_v57 = vsel %vm436_vm3, %v679_v56, -3.4028235e+38 }
 0x53d   : > { %v1353_v58 = vpop.f32.mrf.mxu1  ;;  %v684_v59 = vsel %vm440_vm2, %v683_v57, -inf }
 0x53e   : > { %685 = vmax.xlane.f32.xlu0 %v684_v59 }
 0x542   : > { %1019 = vmax.xlane.f32.xlu0 %v1018_v61 }
 0x5ba   : > { %v853_v62 = vpop.xlane.xlu1 %852 }
 0x5bb   : > { %v854_v63 = vsub.f32 %v850_v49, %v853_v62 }
 0x5bd   : > { %v855_v1 = vmul.f32 1.442695, %v854_v63 }
 0x5bf   : > { %1420 = vpow2.f32 %v855_v1 }
 0x5c7   : > { %v686_v2 = vpop.xlane.xlu0 %685 }
 0x5c8   : > { %v687_v3 = vsub.f32 %v683_v57, %v686_v2 }
 0x5ca   : > { %v688_v4 = vmul.f32 1.442695, %v687_v3 }
 0x5cb   : > { %v1020_v5 = vpop.xlane.xlu0 %1019 }
 0x5cc   : > { %v1421_v6 = vpop.eup %1420  ;;  %1422 = vpow2.f32 %v688_v4  ;;  %v1021_v7 = vsub.f32 %v1017_v60, %v1020_v5 }
 0x5cd   : > { %v857_v9 = vsel %vm440_vm2, %v1421_v6, 0.0 }
 0x5ce   : > { %v1022_v10 = vmul.f32 1.442695, %v1021_v7  ;;  %858 = vadd.xlane.f32.xlu0 %v857_v9 }
 0x5d0   : > { %1424 = vpow2.f32 %v1022_v10 }
 0x5d9   : > { %v1423_v11 = vpop.eup %1422 }
 0x5da   : > { %v690_v12 = vsel %vm440_vm2, %v1423_v11, 0.0 }
 0x5db   : > { %691 = vadd.xlane.f32.xlu0 %v690_v12 }
 0x5dd   : > { %v1425_v13 = vpop.eup %1424 }
 0x5de   : > { %v1024_v14 = vsel %vm440_vm2, %v1425_v13, 0.0 }
 0x5df   : > { %1025 = vadd.xlane.f32.xlu1 %v1024_v14 }
 0x5f0   : > { %863 = vrot.lane.b32.xlu1 %v1555_v23, %s1450_s16 }
 0x5f1   : > { %696 = vrot.lane.b32.xlu0 %v1555_v23, %s1451_s17 }
 0x5f4   : > { %1030 = vrot.lane.b32.xlu1 %v1555_v23, %s1452_s18 }
 0x657   : > { %v859_v15 = vpop.xlane.xlu0 %858 }
 0x658   : > { %1426 = vrcp.f32 %v859_v15 }
 0x664   : > { %v692_v16 = vpop.xlane.xlu0 %691 }
 0x665   : > { %1428 = vrcp.f32 %v692_v16  ;;  %v1427_v19 = vpop.eup %1426 }
 0x666   : > { %v861_v25 = vmul.f32 %v1427_v19, %v1421_v6 }
 0x668   : > { %v1026_v17 = vpop.xlane.xlu1 %1025  ;;  %v697_v18 = vpop.permute.xlu0 %696  ;;  %v862_v23 = vsel %vm436_vm3, %v861_v25, 0.0 }
 0x669   : > { %1430 = vrcp.f32 %v1026_v17  ;;  %1355 = vmatpush3.msra.mxu1 %v697_v18 }
 0x66a   : > { %1364 = vmatprep.subr.mxu1 %v1440_v8 }
 0x66c   : > { %v864_v22 = vpop.permute.xlu1 %863 }
 0x670   : > { %v1031_v29 = vpop.permute.xlu1 %1030 }
 0x672   : > { %v1429_v20 = vpop.eup %1428 }
 0x673   : > { %v694_v21 = vmul.f32 %v1429_v20, %v1423_v11 }
 0x675   : > { %v695_v24 = vsel %vm436_vm3, %v694_v21, 0.0 }
 0x676   : > { %v1431_v26 = vpop.eup %1430  ;;  %1357 = vmatmul.mubr.msk.f32.vlgmr.msra.gmra.mxu1 %vm440_vm2, %v695_v24 }
 0x677   : > { %1365 = vmatpush3.msra.mxu1 %v864_v22  ;;  %1366 = vmatprep.mubr.msk.f32.mxu1 %vm1441_vm1, %v1440_v8  ;;  %v1028_v27 = vmul.f32 %v1431_v26, %v1425_v13 }
 0x678   : > { %1374 = vmatprep.subr.mxu1 %v1440_v8 }
 0x679   : > { %v1029_v30 = vsel %vm436_vm3, %v1028_v27, 0.0 }
 0x67a   : > { %1367 = vmatmul.mubr.msk.f32.vlgmr.msra.gmra.mxu1 %vm440_vm2, %v862_v23 }
 0x67b   : > { %1375 = vmatpush3.msra.mxu1 %v1031_v29  ;;  %1376 = vmatprep.mubr.msk.f32.mxu1 %vm1441_vm1, %v1440_v8 }
 0x67e   : > { %1377 = vmatmul.mubr.msk.f32.vlgmr.msra.gmra.mxu1 %vm440_vm2, %v1029_v30 }
 0x736   : > { %v768_v34 = vpop.f32.mrf.mxu1 }
 0x737   : > { %1107 = vrot.lane.b32.xlu1 %v768_v34, %s1453_s28 }
 0x738   : > { %v1358_v35 = vpop.f32.mrf.mxu1 }
 0x73a   : > { %v935_v36 = vpop.f32.mrf.mxu1 }
 0x73b   : > { %1111 = vrot.lane.b32.xlu0 %v935_v36, %s1454_s30 }
 0x73c   : > { %v1368_v37 = vpop.f32.mrf.mxu1 }
 0x73e   : > { %v1102_v38 = vpop.f32.mrf.mxu1 }
 0x73f   : > { %1115 = vrot.lane.b32.xlu1 %v1102_v38, %s1455_s9 }
 0x740   : > { %v1378_v39 = vpop.f32.mrf.mxu1 }
 0x7a9   : > { %v1108_v40 = vpop.permute.xlu1 %1107 }
 0x7aa   : > { %v1118_v41 = vsel %vm440_vm2, %v1603_v53, %v1108_v40 }
 0x7ad   : > { %v1112_v8 = vpop.permute.xlu0 %1111 }
 0x7ae   : > { %v1120_v42 = vsel %vm1119_vm4, %v1118_v41, %v1112_v8 }
 0x7b1   : > { %v1116_v43 = vpop.permute.xlu1 %1115 }
 0x7b2   : > { %v1122_v44 = vsel %vm1121_vm5, %v1120_v42, %v1116_v43 }
 0x7b3   : > { %1388 = vmatmul.mubr.msk.f32.vlgmr.msra.gmra.mxu0 %vm321_vm0, %v1122_v44 }
 0x873   : > { %v1203_v46 = vpop.f32.mrf.mxu0 }
 0x874   : > { %v1204_v47 = vadd.f32 %v1298_v45, %v1203_v46 }
 0x875   : > { %v1389_v48 = vpop.f32.mrf.mxu0 }
 0x876   : > { %v1207_v49 = vadd.f32 %v1204_v47, %v1515_v0 }
 0x878   : > { %1208 = vst.msk [vmem:[%s317_s14] sm:$0xff] %vm321_vm0, %v1207_v49 }
 0x879 PF: > { %s18_s27 = sadd.s32 1, %s1438_s27  }
 0x87a   : > { %p15_p4 = scmp.ge.s32.totalorder %s18_s27, 4  }
 0x87c   :  { %17 = sbr.rel (!%p15_p4) target bundleno = 1 (0x1), region = 85 }

// kernel: decoder_layer_forward.4
= control target key start
LH: loop header
LB: loop body
LE: loop exit
PB: predicated region body
PF: predicated region fallthrough
CT: control target
= control target key end

     0   :  { %s3201_s0 = inlined_call_operand.vmem [shape: f32[2,8,32], index: 0, kind: input, shape index: {}]   ;;  %s3202_s1 = inlined_call_operand.vmem [shape: f32[2,16,32], index: 1, kind: input, shape index: {}]   ;;  %s3203_s2 = inlined_call_operand.vmem [shape: f32[2,16,32], index: 2, kind: input, shape index: {}]   ;;  %s3204_s3 = inlined_call_operand.vmem [shape: f32[2,8,16], index: 3, kind: input, shape index: {}]   ;;  %s3205_s4 = inlined_call_operand.vmem [shape: f32[1,32], index: 4, kind: input, shape index: {}]   ;;  %s3206_s5 = inlined_call_operand.vmem [shape: f32[1,32], index: 5, kind: input, shape index: {}]   ;;  %s3207_s6 = inlined_call_operand.vmem [shape: f32[32,32], index: 6, kind: input, shape index: {}]   ;;  %s3208_s7 = inlined_call_operand.vmem [shape: f32[1,32], index: 7, kind: input, shape index: {}]   ;;  %s3209_s8 = inlined_call_operand.vmem [shape: f32[32,32], index: 8, kind: input, shape index: {}]   ;;  %s3210_s9 = inlined_call_operand.vmem [shape: f32[1,32], index: 9, kind: input, shape index: {}]   ;;  %s3211_s10 = inlined_call_operand.vmem [shape: f32[32,32], index: 10, kind: input, shape index: {}]   ;;  %s3212_s11 = inlined_call_operand.vmem [shape: f32[1,32], index: 11, kind: input, shape index: {}]   ;;  %s3213_s12 = inlined_call_operand.vmem [shape: f32[32,32], index: 12, kind: input, shape index: {}]   ;;  %s3214_s13 = inlined_call_operand.hbm [shape: f32[1,32], index: 13, kind: input, shape index: {}]   ;;  %s3215_s14 = inlined_call_operand.vmem [shape: f32[2,8,32], index: 14, kind: output, shape index: {0}]   ;;  %s3216_s15 = inlined_call_operand.hbm [shape: f32[2,8,32], index: 15, kind: output, shape index: {1}]  }
   0x1   :  { %3221 = sst [smem:[#allocation10_spill]] %s3201_s0 }
   0x2   :  { %3222 = sst [smem:[#allocation11_spill]] %s3202_s1 }
   0x3   :  { %3223 = sst [smem:[#allocation12_spill]] %s3203_s2 }
   0x4   :  { %3224 = sst [smem:[#allocation13_spill]] %s3214_s13 }
   0x5   :  { %21 = vsyncpa [#allocation3], 0 }
   0x6   :  { %22 = vsyncpa [#allocation4], 0 }
   0x7   :  { %24 = vsyncpa [#allocation4 + $0x1], 0  ;;  %s2819_s18 = smov 0   ;;  %s2821_s19 = smov 0  }
   0x8   :  { %s2823_s20 = smov 0   ;;  %s2825_s21 = smov 0  }
   0x9 LB: > { %3225 = sst [smem:[#allocation8_spill]] %s2723_s20  ;;  %s2840_s22 = sadd.s32 4294967295, %s2727_s21   ;;  %s2727_s21 = sphi %s2825_s21, %s3240_s21   ;;  %s2723_s20 = sphi %s2823_s20, %s3237_s20   ;;  %s2719_s19 = sphi %s2821_s19, %s3239_s19   ;;  %s2715_s18 = sphi %s2819_s18, %s3238_s18  }
   0xa   : > { %s2287_s23 = sadd.s32 4294967294, %s2727_s21   ;;  %s2844_s24 = sadd.s32 1, %s2727_s21  }
   0xb   : > { %s377_s25 = sadd.s32 1, %s2723_s20  ;;  %s374_s26 = ssub.s32 %s2727_s21, %s2844_s24 }
   0xc   : > { %p387_p0 = scmp.ne.s32.totalorder %s2723_s20, %s2719_s19  ;;  %p375_p1 = scmp.eq.s32.totalorder %s374_s26, 0 }
   0xd   : > { %p388_p2 = scmp.eq.s32.totalorder %s2840_s22, 1  ;;  %p393_p3 = scmp.ne.s32.totalorder %s2719_s19, %s2715_s18 }
   0xe   : > { %p394_p4 = scmp.eq.s32.totalorder %s2287_s23, 1  ;;  %p2288_p7 = scmp.ge.s32.totalorder %s2727_s21, 1 }
   0xf   : > { %s2855_s27 = scalar_select %p375_p1, %s2723_s20, %s377_s25  }
  0x10   : > { %p2857_p5 = por %p388_p2, %p387_p0  ;;  %p2861_p6 = por %p394_p4, %p393_p3 }
  0x11   : > { %3226 = sst [smem:[#allocation9_spill]] %s2855_s27  ;;  %p401_p8 = scmp.lt.s32.totalorder %s2727_s21, 3 }
  0x12   : > { %p2575_p9 = scmp.eq.s32.totalorder %s2840_s22, 0  ;;  %s2729_s16 = smov [#allocation2]  }
  0x13   : > { %p2868_p10 = pnand %p2288_p7, %p401_p8  ;;  %s441_s17 = sshll.u32 %s2729_s16, 4  ;;  %s442_s17 = int_to_ptr.vmem [resolvable:$true] %s441_s17 }
  0x14   : > { %s2648_s23 = scalar_lea.vmem %s442_s17, 16  ;;  %s2655_s25 = scalar_lea.vmem %s442_s17, 32 }
  0x15   : > { %p2567_p11 = pneg %p2868_p10  ;;  %p2649_p0 = scmp.ne.s32.totalorder %s442_s17, %s2648_s23 }
  0x16   : > { %p2656_p3 = scmp.lt.s32.totalorder %s442_s17, %s442_s17  ;;  %p2657_p4 = scmp.lt.s32.totalorder %s2655_s25, %s2648_s23 }
  0x17   : > { %p2568_p12 = pnand %p2575_p9, %p2567_p11 }
  0x18   : > { %p2658_p7 = por %p2657_p4, %p2656_p3 }
  0x19   : > { %p2639_p13 = pneg %p2568_p12 }
  0x1b   : > { %p2651_p1 = pnand %p2649_p0, %p2639_p13 }
  0x1d   : > { %p2652_p2 = pneg %p2651_p1 }
  0x1f   : > { %p2659_p8 = pnand %p2658_p7, %p2652_p2 }
  0x21   : > { %2662 = shalt.err (!%p2659_p8)
}
  0x22   : > { %s3230_s13 = sld [smem:[#allocation13_spill]] }
  0x24   : > { %484 = sbr.rel (%p2868_p10) target bundleno = 1751 (0x6d7), region = 76 }
  0x28   : > { %2570 = dma.hbm_to_vmem [thread:$0]  (!%p2568_p12), %s3230_s13, 16, %s442_s17, [#allocation3]  }
  0x29   : > { %2706 = dma.done.wait (%p2575_p9), [#allocation3], 16  }
  0x2a   : > { %2708 = vsyncadd (%p2575_p9), [#allocation3], 4294967280  ;;  %p549_p11 = scmp.lt.s32.totalorder %s2840_s22, 1  ;;  %s3231_s0 = sld [smem:[#allocation10_spill]]  ;;  %vm578_vm0 = vcmask 261120   ;;  %v695_v2 = vld [vmem:[%s3209_s8 + $0x18] sm:$0xff] }
  0x2b   : > { %v694_v3 = vld [vmem:[%s3209_s8 + $0x10] sm:$0xff]  ;;  %2422 = vmatprep.subr.mxu1 %v695_v2  ;;  %v693_v4 = vld [vmem:[%s3209_s8 + $0x8] sm:$0xff]  ;;  %v692_v10 = vld [vmem:[%s3209_s8] sm:$0xff]  ;;  %s3232_s1 = sld [smem:[#allocation11_spill]]  ;;  %v2730_v14 = vmov 0.0   ;;  %vm2731_vm1 = vmmov 0  }
  0x2c   : > { %s2887_s16 = scalar_select %p549_p11, %s2840_s22, 1  ;;  %2423 = vmatpush3.msra.mxu1 %v695_v2  ;;  %v610_v13 = vld [vmem:[%s3207_s6 + $0x18] sm:$0xff]  ;;  %2411 = vmatprep.subr.mxu0 %v2730_v14  ;;  %v609_v15 = vld [vmem:[%s3207_s6 + $0x10] sm:$0xff]  ;;  %v608_v16 = vld [vmem:[%s3207_s6 + $0x8] sm:$0xff]  ;;  %vm953_vm2 = vcmask 64512   ;;  %vm1034_vm4 = vcmask 130048  }
  0x2d   : > { %2424 = vmatprep.subr.mxu1 %v694_v3  ;;  %2419 = vmatprep.mubr.msk.f32.mxu0 %vm2731_vm1, %v2730_v14  ;;  %v607_v17 = vld [vmem:[%s3207_s6] sm:$0xff]  ;;  %v787_v18 = vld [vmem:[%s3211_s10 + $0x18] sm:$0xff]  ;;  %v786_v19 = vld [vmem:[%s3211_s10 + $0x10] sm:$0xff]  ;;  %s2734_s17 = smov 104   ;;  %s3234_s2 = sld [smem:[#allocation12_spill]]  ;;  %vm1958_vm5 = vcmask 195584  }
  0x2e   : > { %s2890_s23 = sshll.u32 %s2887_s16, 3  ;;  %2425 = vmatpush3.msra.mxu1 %v694_v3  ;;  %s3218_s13 = sshll.u32 %s2887_s16, 4  ;;  %2412 = vmatpush3.msra.mxu0 %v610_v13  ;;  %v785_v20 = vld [vmem:[%s3211_s10 + $0x8] sm:$0xff]  ;;  %v784_v21 = vld [vmem:[%s3211_s10] sm:$0xff] }
  0x2f   : > { %2426 = vmatprep.subr.mxu1 %v693_v4  ;;  %2413 = vmatprep.subr.mxu0 %v2730_v14  ;;  %v2301_v26 = vld [vmem:[%s3205_s4] ss:$0 sm:$0xff]  ;;  %s3233_s20 = sshll.u32 %s2887_s16, 4  ;;  %s3235_s16 = smov 120  }
  0x30   : > { %s552_s30 = scalar_lea.vmem %s3231_s0, %s2890_s23  ;;  %2427 = vmatpush3.msra.mxu1 %v693_v4  ;;  %2414 = vmatpush3.msra.mxu0 %v609_v15  ;;  %v2302_v28 = vld [vmem:[%s3206_s5] ss:$0 sm:$0xff]  ;;  %s3219_s0 = smov 120  }
  0x31   : > { %v2896_v0 = vld [vmem:[%s552_s30] sm:$0xff]  ;;  %s557_s27 = scalar_lea.vmem %s3232_s1, %s3218_s13  ;;  %2428 = vmatprep.subr.mxu1 %v692_v10  ;;  %2415 = vmatprep.subr.mxu0 %v2730_v14  ;;  %s2736_s30 = smov 16  }
  0x32   : > { %v579_v1 = vsel %vm578_vm0, %v2896_v0, 0.0  ;;  %v572_v11 = vld [vmem:[%s557_s27] sm:$0xff]  ;;  %2429 = vmatpush3.msra.mxu1 %v692_v10  ;;  %v573_v12 = vld [vmem:[%s557_s27 + $0x8] sm:$0xff]  ;;  %2416 = vmatpush3.msra.mxu0 %v608_v16  ;;  %s2733_s27 = smov 112   ;;  %s546_s26 = sand.u32 1, %s2719_s19  }
  0x33   : > { %580 = vadd.xlane.f32.xlu0 %v579_v1  ;;  %2430 = vmatprep.mubr.msk.f32.mxu1 %vm578_vm0, %v572_v11  ;;  %v2305_v31 = vld [vmem:[%s3210_s9] ss:$0 sm:$0xff]  ;;  %s562_s25 = scalar_lea.vmem %s3234_s2, %s3233_s20  ;;  %s570_s13 = scalar_lea.vmem %s3215_s14, %s2890_s23 }
  0x34   : > { %2431 = vmatmul.mubr.msk.f32.vlgmr.msra.gmra.mxu1 %vm578_vm0, %v573_v12  ;;  %2417 = vmatprep.subr.mxu0 %v2730_v14  ;;  %v575_v36 = vld [vmem:[%s562_s25 + $0x8] sm:$0xff]  ;;  %v574_v37 = vld [vmem:[%s562_s25] sm:$0xff]  ;;  %s566_s25 = scalar_lea.vmem %s3204_s3, %s2890_s23  ;;  %s2140_s23 = scalar_lea.sflag [#allocation4], %s546_s26 }
  0x35   : > { %2418 = vmatpush3.msra.mxu0 %v607_v17  ;;  %2444 = vmatprep.subr.mxu1 %v787_v18  ;;  %v2303_v38 = vld [vmem:[%s3208_s7] ss:$0 sm:$0xff] }
  0x36   : > { %2433 = vmatprep.subr.mxu0 %v787_v18  ;;  %2445 = vmatpush3.msra.mxu1 %v787_v18  ;;  %v2308_v45 = vld [vmem:[%s3212_s11] ss:$0 sm:$0xff] }
  0x37   : > { %2446 = vmatprep.subr.mxu1 %v786_v19  ;;  %2452 = vmatprep.mubr.msk.f32.mxu1 %vm578_vm0, %v574_v37  ;;  %v3046_v61 = vld [vmem:[%s566_s25] sm:$0xff] }
  0x38   : > { %2447 = vmatpush3.msra.mxu1 %v786_v19  ;;  %vm952_vm3 = vcmp.gt.f32.partialorder %v3046_v61, 0.0 }
  0x39   : > { %2448 = vmatprep.subr.mxu1 %v785_v20 }
  0x3a   : > { %2449 = vmatpush3.msra.mxu1 %v785_v20 }
  0x3b   : > { %2450 = vmatprep.subr.mxu1 %v784_v21 }
  0x3c   : > { %2451 = vmatpush3.msra.mxu1 %v784_v21 }
  0x3d   : > { %2462 = vmatprep.subr.mxu1 %v2730_v14  ;;  %2453 = vmatmul.mubr.msk.f32.vlgmr.msra.gmra.mxu1 %vm578_vm0, %v575_v36 }
  0x3e   : > { %2466 = vmatprep.mubr.msk.f32.mxu1 %vm2731_vm1, %v2730_v14 }
  0xbc   : > { %v581_v5 = vpop.xlane.xlu0 %580 }
  0xbd   : > { %v583_v6 = vmul.f32 0.03125, %v581_v5 }
  0xbf   : > { %v584_v7 = vsub.f32 %v2896_v0, %v583_v6 }
  0xc1   : > { %v585_v8 = vmul.f32 %v584_v7, %v584_v7 }
  0xc3   : > { %v586_v9 = vsel %vm578_vm0, %v585_v8, 0.0 }
  0xc4   : > { %587 = vadd.xlane.f32.xlu0 %v586_v9 }
  0xf4   : > { %v2432_v32 = vpop.f32.mrf.mxu1 }
  0xf5   : > { %v781_v33 = vadd.f32 %v2432_v32, %v2305_v31 }
  0xf6   : > { %v775_v34 = vpop.f32.mrf.mxu1 }
  0xf7   : > { %1194 = vrot.lane.b32.xlu1 %v781_v33, %s3219_s0  ;;  %v776_v35 = vadd.f32 %v2305_v31, %v775_v34 }
  0xfb   : > { %1192 = vrot.lane.b32.xlu1 %v776_v35, %s3219_s0  ;;  %s2735_s0 = smov 8  }
  0xfd   : > { %v2454_v50 = vpop.f32.mrf.mxu1 }
  0xfe   : > { %v3015_v51 = vadd.f32 %v2454_v50, %v2308_v45 }
  0xff   : > { %1448 = vrot.lane.b32.xlu1 %v781_v33, %s2733_s27  ;;  %v942_v52 = vpop.f32.mrf.mxu1 }
 0x100   : > { %v3019_v53 = vadd.f32 %v2308_v45, %v942_v52 }
 0x103   : > { %1446 = vrot.lane.b32.xlu1 %v776_v35, %s2733_s27 }
 0x107   : > { %1698 = vrot.lane.b32.xlu1 %v781_v33, %s2734_s17 }
 0x14d   : > { %v588_v22 = vpop.xlane.xlu0 %587 }
 0x14e   : > { %v589_v23 = vmul.f32 0.03125, %v588_v22 }
 0x150   : > { %v590_v24 = vadd.f32 1e-12, %v589_v23 }
 0x152   : > { %2619 = vrsqrt.f32 %v590_v24 }
 0x15f   : > { %v2620_v25 = vpop.eup %2619 }
 0x160   : > { %v592_v27 = vmul.f32 %v2620_v25, %v584_v7 }
 0x162   : > { %v599_v29 = vmul.f32 %v2301_v26, %v592_v27 }
 0x164   : > { %v606_v30 = vadd.f32 %v2302_v28, %v599_v29 }
 0x166   : > { %2420 = vmatmul.mubr.msk.f32.vlgmr.msra.gmra.mxu0 %vm578_vm0, %v606_v30 }
 0x167   : > { %2434 = vmatpush3.msra.mxu0 %v787_v18  ;;  %2441 = vmatprep.mubr.msk.f32.mxu0 %vm578_vm0, %v572_v11 }
 0x168   : > { %2435 = vmatprep.subr.mxu0 %v786_v19 }
 0x169   : > { %2436 = vmatpush3.msra.mxu0 %v786_v19  ;;  %v1195_v43 = vpop.permute.xlu1 %1194 }
 0x16a   : > { %2437 = vmatprep.subr.mxu0 %v785_v20 }
 0x16b   : > { %2438 = vmatpush3.msra.mxu0 %v785_v20 }
 0x16c   : > { %2439 = vmatprep.subr.mxu0 %v784_v21 }
 0x16d   : > { %2440 = vmatpush3.msra.mxu0 %v784_v21  ;;  %v1193_v47 = vpop.permute.xlu1 %1192 }
 0x16e   : > { %2442 = vmatmul.mubr.msk.f32.vlgmr.msra.gmra.mxu0 %vm578_vm0, %v573_v12  ;;  %2455 = vmatprep.subr.mxu0 %v2730_v14 }
 0x16f   : > { %2459 = vmatprep.mubr.msk.f32.mxu0 %vm2731_vm1, %v2730_v14  ;;  %2456 = vmatpush3.xpose.msk.msra.mxu0 %vm953_vm2, %v781_v33 }
 0x170   : > { %2457 = vmatprep.subr.mxu0 %v2730_v14 }
 0x171   : > { %v1449_v54 = vpop.permute.xlu1 %1448 }
 0x173   : > { %2458 = vmatpush3.xpose.msk.msra.mxu0 %vm953_vm2, %v776_v35 }
 0x174   : > { %2476 = vmatprep.subr.mxu0 %v2730_v14 }
 0x175   : > { %v1447_v55 = vpop.permute.xlu1 %1446 }
 0x179   : > { %v1699_v56 = vpop.permute.xlu1 %1698 }
 0x226   : > { %v687_v39 = vpop.f32.mrf.mxu0 }
 0x227   : > { %v688_v40 = vadd.f32 %v2303_v38, %v687_v39 }
 0x228   : > { %v2421_v41 = vpop.f32.mrf.mxu0 }
 0x229   : > { %v691_v42 = vmul.f32 0.35355338, %v688_v40 }
 0x22b   : > { %1444 = vrot.lane.b32.xlu1 %v691_v42, %s2733_s27  ;;  %1190 = vrot.lane.b32.xlu0 %v691_v42, %s3235_s16 }
 0x22c   : > { %2460 = vmatmul.mubr.msk.f32.vlgmr.msra.gmra.mxu0 %vm953_vm2, %v691_v42 }
 0x22d   : > { %2477 = vmatpush3.xpose.msk.msra.mxu0 %vm953_vm2, %v1195_v43  ;;  %2480 = vmatprep.mubr.msk.f32.mxu0 %vm2731_vm1, %v2730_v14 }
 0x22e   : > { %2478 = vmatprep.subr.mxu0 %v2730_v14  ;;  %v2443_v44 = vpop.f32.mrf.mxu0 }
 0x22f   : > { %1696 = vrot.lane.b32.xlu1 %v776_v35, %s2734_s17  ;;  %v3000_v46 = vadd.f32 %v2443_v44, %v2308_v45 }
 0x230   : > { %v861_v48 = vpop.f32.mrf.mxu0 }
 0x231   : > { %2479 = vmatpush3.xpose.msk.msra.mxu0 %vm953_vm2, %v1193_v47  ;;  %1541 = vrot.lane.b32.xlu0 %v3000_v46, %s2733_s27  ;;  %v3005_v49 = vadd.f32 %v2308_v45, %v861_v48 }
 0x232   : > { %2497 = vmatprep.subr.mxu0 %v2730_v14  ;;  %2463 = vmatpush3.msra.mxu1 %v3000_v46 }
 0x233   : > { %1694 = vrot.lane.b32.xlu1 %v691_v42, %s2734_s17  ;;  %2464 = vmatprep.subr.mxu1 %v2730_v14 }
 0x234   : > { %2465 = vmatpush3.msra.mxu1 %v3005_v49 }
 0x235   : > { %1287 = vrot.lane.b32.xlu0 %v3005_v49, %s3235_s16  ;;  %2469 = vmatprep.subr.mxu1 %v2730_v14 }
 0x237   : > { %1370 = vrot.lane.b32.xlu1 %v3015_v51, %s3235_s16 }
 0x23b   : > { %1368 = vrot.lane.b32.xlu1 %v3019_v53, %s3235_s16 }
 0x23f   : > { %1289 = vrot.lane.b32.xlu1 %v3000_v46, %s3235_s16  ;;  %s2293_s16 = sshll.u32 %s546_s26, 3 }
 0x240   : > { %s548_s25 = scalar_lea.vmem [#allocation5], %s2293_s16 }
 0x29d   : > { %v1191_v57 = vpop.permute.xlu0 %1190  ;;  %v1445_v58 = vpop.permute.xlu1 %1444 }
 0x29e   : > { %2481 = vmatmul.mubr.msk.f32.vlgmr.msra.gmra.mxu0 %vm953_vm2, %v1191_v57 }
 0x29f   : > { %2498 = vmatpush3.xpose.msk.msra.mxu0 %vm953_vm2, %v1449_v54  ;;  %2501 = vmatprep.mubr.msk.f32.mxu0 %vm2731_vm1, %v2730_v14 }
 0x2a0   : > { %2499 = vmatprep.subr.mxu0 %v2730_v14 }
 0x2a1   : > { %v1697_v59 = vpop.permute.xlu1 %1696 }
 0x2a3   : > { %2500 = vmatpush3.xpose.msk.msra.mxu0 %vm953_vm2, %v1447_v55  ;;  %v3058_v12 = vpop.permute.xlu0 %1541 }
 0x2a4   : > { %2518 = vmatprep.subr.mxu0 %v2730_v14 }
 0x2a5   : > { %v1695_v60 = vpop.permute.xlu1 %1694 }
 0x2a6   : > { %2502 = vmatmul.mubr.msk.f32.vlgmr.msra.gmra.mxu0 %vm953_vm2, %v1445_v58 }
 0x2a7   : > { %2519 = vmatpush3.xpose.msk.msra.mxu0 %vm953_vm2, %v1699_v56  ;;  %2522 = vmatprep.mubr.msk.f32.mxu0 %vm2731_vm1, %v2730_v14  ;;  %v1288_v17 = vpop.permute.xlu0 %1287 }
 0x2a8   : > { %2520 = vmatprep.subr.mxu0 %v2730_v14 }
 0x2a9   : > { %v1371_v23 = vpop.permute.xlu1 %1370 }
 0x2ab   : > { %2521 = vmatpush3.xpose.msk.msra.mxu0 %vm953_vm2, %v1697_v59 }
 0x2ac   : > { %2539 = vmatprep.subr.mxu0 %v2730_v14 }
 0x2ad   : > { %v1369_v24 = vpop.permute.xlu1 %1368 }
 0x2ae   : > { %2523 = vmatmul.mubr.msk.f32.vlgmr.msra.gmra.mxu0 %vm953_vm2, %v1695_v60 }
 0x2af   : > { %2547 = vmatprep.mubr.msk.f32.mxu0 %vm2731_vm1, %v2730_v14 }
 0x2b1   : > { %v1290_v25 = vpop.permute.xlu1 %1289 }
 0x2ec   : > { %v1029_v62 = vpop.f32.mrf.mxu0 }
 0x2ed   : > { %v1033_v63 = vsel %vm952_vm3, %v1029_v62, -3.4028235e+38 }
 0x2ee   : > { %v2461_v1 = vpop.f32.mrf.mxu0  ;;  %v1035_v2 = vsel %vm1034_vm4, %v1033_v63, -inf }
 0x2ef   : > { %1036 = vmax.xlane.f32.xlu0 %v1035_v2 }
 0x35e   : > { %v1268_v3 = vpop.f32.mrf.mxu0 }
 0x35f   : > { %v1272_v4 = vsel %vm952_vm3, %v1268_v3, -3.4028235e+38 }
 0x360   : > { %v2482_v5 = vpop.f32.mrf.mxu0  ;;  %v1273_v6 = vsel %vm1034_vm4, %v1272_v4, -inf }
 0x361   : > { %1274 = vmax.xlane.f32.xlu1 %v1273_v6  ;;  %v1978_v6 = vld [vmem:[%s3213_s12 + $0x18] sm:$0xff] }
 0x362   : > { %2540 = vmatpush3.msra.mxu0 %v1978_v6 }
 0x363   : > { %2541 = vmatprep.subr.mxu0 %v2730_v14 }
 0x366   : > { %v1522_v7 = vpop.f32.mrf.mxu0 }
 0x367   : > { %v1526_v8 = vsel %vm952_vm3, %v1522_v7, -3.4028235e+38  ;;  %v1977_v7 = vld [vmem:[%s3213_s12 + $0x10] sm:$0xff] }
 0x368   : > { %v2503_v9 = vpop.f32.mrf.mxu0  ;;  %v1527_v10 = vsel %vm1034_vm4, %v1526_v8, -inf  ;;  %2542 = vmatpush3.msra.mxu0 %v1977_v7 }
 0x369   : > { %1528 = vmax.xlane.f32.xlu0 %v1527_v10  ;;  %v1976_v9 = vld [vmem:[%s3213_s12 + $0x8] sm:$0xff]  ;;  %2543 = vmatprep.subr.mxu0 %v2730_v14 }
 0x36a   : > { %2544 = vmatpush3.msra.mxu0 %v1976_v9 }
 0x36b   : > { %2545 = vmatprep.subr.mxu0 %v2730_v14 }
 0x36e   : > { %v1772_v11 = vpop.f32.mrf.mxu0 }
 0x36f   : > { %v1776_v13 = vsel %vm952_vm3, %v1772_v11, -3.4028235e+38 }
 0x370   : > { %v2524_v15 = vpop.f32.mrf.mxu0  ;;  %v1777_v16 = vsel %vm1034_vm4, %v1776_v13, -inf }
 0x371   : > { %1778 = vmax.xlane.f32.xlu0 %v1777_v16 }
 0x372   : > { %1539 = vrot.lane.b32.xlu1 %v3005_v49, %s2733_s27 }
 0x378   : > { %v1037_v18 = vpop.xlane.xlu0 %1036 }
 0x379   : > { %v1038_v19 = vsub.f32 %v1033_v63, %v1037_v18 }
 0x37b   : > { %v1039_v20 = vmul.f32 1.442695, %v1038_v19 }
 0x37d   : > { %2621 = vpow2.f32 %v1039_v20 }
 0x387   : > { %1620 = vrot.lane.b32.xlu0 %v3015_v51, %s2733_s27 }
 0x38a   : > { %v2622_v21 = vpop.eup %2621 }
 0x38b   : > { %v1041_v22 = vsel %vm1034_vm4, %v2622_v21, 0.0 }
 0x396   : > { %1042 = vadd.xlane.f32.xlu1 %v1041_v22 }
 0x3a7   : > { %1618 = vrot.lane.b32.xlu1 %v3019_v53, %s2733_s27  ;;  %s2156_s27 = sshll.u32 %s548_s25, 4  ;;  %s2157_s27 = int_to_ptr.vmem [resolvable:$true] %s2156_s27 }
 0x3ea   : > { %v1275_v26 = vpop.xlane.xlu1 %1274 }
 0x3eb   : > { %v1276_v27 = vsub.f32 %v1272_v4, %v1275_v26 }
 0x3ed   : > { %v1277_v28 = vmul.f32 1.442695, %v1276_v27 }
 0x3ee   : > { %v1540_v38 = vpop.permute.xlu1 %1539 }
 0x3ef   : > { %2623 = vpow2.f32 %v1277_v28 }
 0x3f2   : > { %v1529_v29 = vpop.xlane.xlu0 %1528 }
 0x3f3   : > { %v1530_v30 = vsub.f32 %v1526_v8, %v1529_v29 }
 0x3f5   : > { %v1531_v31 = vmul.f32 1.442695, %v1530_v30 }
 0x3f7   : > { %2625 = vpow2.f32 %v1531_v31 }
 0x3fa   : > { %v1779_v36 = vpop.xlane.xlu0 %1778 }
 0x3fb   : > { %v1780_v37 = vsub.f32 %v1776_v13, %v1779_v36 }
 0x3fc   : > { %v2624_v32 = vpop.eup %2623 }
 0x3fd   : > { %v1279_v33 = vsel %vm1034_vm4, %v2624_v32, 0.0  ;;  %v1781_v39 = vmul.f32 1.442695, %v1780_v37 }
 0x3fe   : > { %1280 = vadd.xlane.f32.xlu0 %v1279_v33  ;;  %v2333_v33 = vld [vmem:[#allocation2] ss:$0 sm:$0xff] }
 0x404   : > { %v2626_v34 = vpop.eup %2625 }
 0x405   : > { %v1533_v35 = vsel %vm1034_vm4, %v2626_v34, 0.0 }
 0x406   : > { %1534 = vadd.xlane.f32.xlu1 %v1533_v35 }
 0x414   : > { %1791 = vrot.lane.b32.xlu0 %v3000_v46, %s2734_s17  ;;  %v1621_v46 = vpop.permute.xlu0 %1620 }
 0x417   : > { %1789 = vrot.lane.b32.xlu1 %v3005_v49, %s2734_s17 }
 0x41b   : > { %1868 = vrot.lane.b32.xlu1 %v3019_v53, %s2734_s17 }
 0x41f   : > { %v1043_v40 = vpop.xlane.xlu1 %1042 }
 0x420   : > { %2627 = vrcp.f32 %v1043_v40 }
 0x421   : > { %2629 = vpow2.f32 %v1781_v39 }
 0x423   : > { %v1619_v48 = vpop.permute.xlu1 %1618 }
 0x42d   : > { %v2628_v41 = vpop.eup %2627 }
 0x42e   : > { %v1045_v42 = vmul.f32 %v2628_v41, %v2622_v21  ;;  %v2630_v43 = vpop.eup %2629 }
 0x42f   : > { %v1783_v45 = vsel %vm1034_vm4, %v2630_v43, 0.0 }
 0x430   : > { %v1046_v44 = vsel %vm952_vm3, %v1045_v42, 0.0 }
 0x431   : > { %2467 = vmatmul.mubr.msk.f32.vlgmr.msra.gmra.mxu1 %vm1034_vm4, %v1046_v44 }
 0x432   : > { %2470 = vmatpush3.msra.mxu1 %v3015_v51  ;;  %2473 = vmatprep.mubr.msk.f32.mxu1 %vm2731_vm1, %v2730_v14 }
 0x433   : > { %2471 = vmatprep.subr.mxu1 %v2730_v14  ;;  %1784 = vadd.xlane.f32.xlu0 %v1783_v45 }
 0x434   : > { %2472 = vmatpush3.msra.mxu1 %v3019_v53 }
 0x435   : > { %2483 = vmatprep.subr.mxu1 %v2730_v14  ;;  %2474 = vmatmul.mubr.msk.f32.vlgmr.msra.gmra.mxu1 %vm1034_vm4, %v1046_v44 }
 0x436   : > { %2484 = vmatpush3.msra.mxu1 %v1290_v25  ;;  %2487 = vmatprep.mubr.msk.f32.mxu1 %vm2731_vm1, %v2730_v14 }
 0x437   : > { %2485 = vmatprep.subr.mxu1 %v2730_v14 }
 0x438   : > { %2486 = vmatpush3.msra.mxu1 %v1288_v17  ;;  %v1975_v17 = vld [vmem:[%s3213_s12] sm:$0xff] }
 0x439   : > { %2490 = vmatprep.subr.mxu1 %v2730_v14  ;;  %2546 = vmatpush3.msra.mxu0 %v1975_v17 }
 0x449   : > { %1870 = vrot.lane.b32.xlu0 %v3015_v51, %s2734_s17  ;;  %s2737_s17 = smov 24  }
 0x487   : > { %v1281_v47 = vpop.xlane.xlu0 %1280 }
 0x488   : > { %2631 = vrcp.f32 %v1281_v47 }
 0x48b   : > { %v1792_v56 = vpop.permute.xlu0 %1791 }
 0x48f   : > { %v1535_v49 = vpop.xlane.xlu1 %1534 }
 0x490   : > { %2633 = vrcp.f32 %v1535_v49 }
 0x493   : > { %v1790_v57 = vpop.permute.xlu1 %1789 }
 0x495   : > { %v2632_v50 = vpop.eup %2631 }
 0x496   : > { %v1283_v52 = vmul.f32 %v2632_v50, %v2624_v32 }
 0x497   : > { %v1869_v1 = vpop.permute.xlu1 %1868 }
 0x498   : > { %v1284_v53 = vsel %vm952_vm3, %v1283_v52, 0.0 }
 0x499   : > { %2488 = vmatmul.mubr.msk.f32.vlgmr.msra.gmra.mxu1 %vm1034_vm4, %v1284_v53 }
 0x49a   : > { %2491 = vmatpush3.msra.mxu1 %v1371_v23  ;;  %2494 = vmatprep.mubr.msk.f32.mxu1 %vm2731_vm1, %v2730_v14 }
 0x49b   : > { %2492 = vmatprep.subr.mxu1 %v2730_v14 }
 0x49c   : > { %2493 = vmatpush3.msra.mxu1 %v1369_v24 }
 0x49d   : > { %v2634_v51 = vpop.eup %2633  ;;  %2504 = vmatprep.subr.mxu1 %v2730_v14  ;;  %2495 = vmatmul.mubr.msk.f32.vlgmr.msra.gmra.mxu1 %vm1034_vm4, %v1284_v53 }
 0x49e   : > { %2505 = vmatpush3.msra.mxu1 %v3058_v12  ;;  %2508 = vmatprep.mubr.msk.f32.mxu1 %vm2731_vm1, %v2730_v14  ;;  %v1537_v54 = vmul.f32 %v2634_v51, %v2626_v34 }
 0x49f   : > { %2506 = vmatprep.subr.mxu1 %v2730_v14 }
 0x4a0   : > { %2507 = vmatpush3.msra.mxu1 %v1540_v38  ;;  %v1538_v55 = vsel %vm952_vm3, %v1537_v54, 0.0 }
 0x4a1   : > { %2511 = vmatprep.subr.mxu1 %v2730_v14  ;;  %2509 = vmatmul.mubr.msk.f32.vlgmr.msra.gmra.mxu1 %vm1034_vm4, %v1538_v55 }
 0x4a2   : > { %2512 = vmatpush3.msra.mxu1 %v1621_v46  ;;  %2515 = vmatprep.mubr.msk.f32.mxu1 %vm2731_vm1, %v2730_v14 }
 0x4a3   : > { %2513 = vmatprep.subr.mxu1 %v2730_v14 }
 0x4a4   : > { %2514 = vmatpush3.msra.mxu1 %v1619_v48 }
 0x4a5   : > { %2525 = vmatprep.subr.mxu1 %v2730_v14  ;;  %2516 = vmatmul.mubr.msk.f32.vlgmr.msra.gmra.mxu1 %vm1034_vm4, %v1538_v55 }
 0x4a6   : > { %2526 = vmatpush3.msra.mxu1 %v1792_v56  ;;  %2529 = vmatprep.mubr.msk.f32.mxu1 %vm2731_vm1, %v2730_v14 }
 0x4a7   : > { %2527 = vmatprep.subr.mxu1 %v2730_v14 }
 0x4a8   : > { %2528 = vmatpush3.msra.mxu1 %v1790_v57 }
 0x4a9   : > { %2532 = vmatprep.subr.mxu1 %v2730_v14 }
 0x4bc   : > { %v1785_v58 = vpop.xlane.xlu0 %1784 }
 0x4bd   : > { %2635 = vrcp.f32 %v1785_v58 }
 0x4c0   : > { %v1871_v63 = vpop.permute.xlu0 %1870 }
 0x4ca   : > { %v2636_v59 = vpop.eup %2635 }
 0x4cb   : > { %v1787_v60 = vmul.f32 %v2636_v59, %v2630_v43 }
 0x4cd   : > { %v1788_v62 = vsel %vm952_vm3, %v1787_v60, 0.0 }
 0x4ce   : > { %2530 = vmatmul.mubr.msk.f32.vlgmr.msra.gmra.mxu1 %vm1034_vm4, %v1788_v62 }
 0x4cf   : > { %2533 = vmatpush3.msra.mxu1 %v1871_v63  ;;  %2536 = vmatprep.mubr.msk.f32.mxu1 %vm2731_vm1, %v2730_v14 }
 0x4d0   : > { %2534 = vmatprep.subr.mxu1 %v2730_v14 }
 0x4d1   : > { %2535 = vmatpush3.msra.mxu1 %v1869_v1 }
 0x4d2   : > { %2537 = vmatmul.mubr.msk.f32.vlgmr.msra.gmra.mxu1 %vm1034_vm4, %v1788_v62  ;;  %2550 = vmatprep.subr.mxu1 %v2730_v14 }
 0x4d3   : > { %2558 = vmatprep.mubr.msk.f32.mxu1 %vm2731_vm1, %v2730_v14  ;;  %2551 = vmatpush3.msra.mxu1 %v1978_v6 }
 0x4d4   : > { %2552 = vmatprep.subr.mxu1 %v2730_v14 }
 0x4d5   : > { %2553 = vmatpush3.msra.mxu1 %v1977_v7 }
 0x4d6   : > { %2554 = vmatprep.subr.mxu1 %v2730_v14 }
 0x4d7   : > { %2555 = vmatpush3.msra.mxu1 %v1976_v9 }
 0x4d8   : > { %2556 = vmatprep.subr.mxu1 %v2730_v14 }
 0x4d9   : > { %2557 = vmatpush3.msra.mxu1 %v1975_v17 }
 0x4f1   : > { %v1116_v61 = vpop.f32.mrf.mxu1 }
 0x4f3   : > { %v2468_v2 = vpop.f32.mrf.mxu1 }
 0x4f5   : > { %v1186_v3 = vpop.f32.mrf.mxu1 }
 0x4f7   : > { %v2475_v4 = vpop.f32.mrf.mxu1 }
 0x559   : > { %v1362_v5 = vpop.f32.mrf.mxu1 }
 0x55a   : > { %1945 = vrot.lane.b32.xlu0 %v1362_v5, %s2735_s0 }
 0x55b   : > { %v2489_v8 = vpop.f32.mrf.mxu1 }
 0x55d   : > { %v1440_v10 = vpop.f32.mrf.mxu1 }
 0x55e   : > { %1961 = vrot.lane.b32.xlu0 %v1440_v10, %s2735_s0  ;;  %s2663_s0 = scalar_lea.vmem %s2157_s27, 128 }
 0x55f   : > { %v2496_v11 = vpop.f32.mrf.mxu1  ;;  %p2664_p9 = scmp.ne.s32.totalorder %s2157_s27, %s2663_s0 }
 0x561   : > { %v1614_v12 = vpop.f32.mrf.mxu1  ;;  %p2665_p10 = pnand %p2664_p9, %p2857_p5 }
 0x562   : > { %1949 = vrot.lane.b32.xlu1 %v1614_v12, %s2736_s30 }
 0x563   : > { %v2510_v13 = vpop.f32.mrf.mxu1  ;;  %p2666_p12 = pneg %p2665_p10 }
 0x565   : > { %v1690_v15 = vpop.f32.mrf.mxu1 }
 0x566   : > { %1965 = vrot.lane.b32.xlu0 %v1690_v15, %s2736_s30  ;;  %s2337_s30 = sshll.u32 %s2840_s22, 7  ;;  %s2738_s22 = smov [#allocation5]  }
 0x567   : > { %v2517_v16 = vpop.f32.mrf.mxu1  ;;  %s3165_s2 = scalar_lea.hbm %s3216_s15, %s2337_s30  ;;  %s2667_s16 = sshll.u32 %s2738_s22, 4  ;;  %s2668_s16 = int_to_ptr.vmem [resolvable:$false] %s2667_s16 }
 0x568   : > { %s2669_s20 = scalar_lea.vmem %s2668_s16, 256  ;;  %p2670_p13 = scmp.lt.s32.totalorder %s2157_s27, %s2668_s16 }
 0x569   : > { %p2671_p0 = scmp.lt.s32.totalorder %s2669_s20, %s2663_s0 }
 0x56b   : > { %p2672_p1 = por %p2671_p0, %p2670_p13 }
 0x56d   : > { %p2673_p2 = pnand %p2672_p1, %p2666_p12 }
 0x58e   : > { %v1864_v18 = vpop.f32.mrf.mxu1 }
 0x58f   : > { %1953 = vrot.lane.b32.xlu1 %v1864_v18, %s2737_s17 }
 0x590   : > { %v2531_v19 = vpop.f32.mrf.mxu1 }
 0x592   : > { %v1940_v20 = vpop.f32.mrf.mxu1 }
 0x593   : > { %1969 = vrot.lane.b32.xlu1 %v1940_v20, %s2737_s17 }
 0x594   : > { %v2538_v21 = vpop.f32.mrf.mxu1 }
 0x5cc   : > { %v1946_v14 = vpop.permute.xlu0 %1945 }
 0x5cd   : > { %v1956_v24 = vsel %vm953_vm2, %v1116_v61, %v1946_v14 }
 0x5d0   : > { %v1962_v23 = vpop.permute.xlu0 %1961 }
 0x5d1   : > { %v1972_v29 = vsel %vm953_vm2, %v1186_v3, %v1962_v23 }
 0x5d4   : > { %v1950_v22 = vpop.permute.xlu1 %1949 }
 0x5d5   : > { %v1957_v25 = vsel %vm1034_vm4, %v1956_v24, %v1950_v22 }
 0x5d8   : > { %v1966_v27 = vpop.permute.xlu0 %1965 }
 0x5d9   : > { %v1973_v30 = vsel %vm1034_vm4, %v1972_v29, %v1966_v27 }
 0x601   : > { %v1954_v26 = vpop.permute.xlu1 %1953 }
 0x602   : > { %v1959_v28 = vsel %vm1958_vm5, %v1957_v25, %v1954_v26 }
 0x603   : > { %2548 = vmatmul.mubr.msk.f32.vlgmr.msra.gmra.mxu0 %vm578_vm0, %v1959_v28 }
 0x605   : > { %v1970_v31 = vpop.permute.xlu1 %1969 }
 0x606   : > { %v1974_v32 = vsel %vm1958_vm5, %v1973_v30, %v1970_v31 }
 0x607   : > { %2559 = vmatmul.mubr.msk.f32.vlgmr.msra.gmra.mxu1 %vm578_vm0, %v1974_v32 }
 0x6c3   : > { %v2055_v34 = vpop.f32.mrf.mxu0 }
 0x6c4   : > { %v2056_v35 = vadd.f32 %v2333_v33, %v2055_v34 }
 0x6c5   : > { %v2549_v36 = vpop.f32.mrf.mxu0 }
 0x6c6   : > { %v2132_v37 = vadd.f32 %v2056_v35, %v2896_v0 }
 0x6c7   : > { %v2128_v38 = vpop.f32.mrf.mxu1 }
 0x6c8   : > { %2133 = vst.msk [vmem:[%s570_s13] sm:$0xff] %vm578_vm0, %v2132_v37  ;;  %v2129_v39 = vadd.f32 %v2333_v33, %v2128_v38 }
 0x6c9   : > { %v2560_v40 = vpop.f32.mrf.mxu1 }
 0x6ca   : > { %2134 = vst.msk [vmem:[%s548_s25] sm:$0xff] %vm578_vm0, %v2129_v39 }
 0x6cb   : > { %2676 = shalt.err (!%p2673_p2)
}
 0x6cc   : > { %s2677_s1 = scalar_lea.hbm %s3165_s2, 128  ;;  %s2681_s30 = scalar_lea.hbm %s3216_s15, 256 }
 0x6cd   : > { %p2678_p3 = scmp.ne.s32.totalorder %s3165_s2, %s2677_s1  ;;  %p2682_p8 = scmp.lt.s32.totalorder %s3165_s2, %s3216_s15 }
 0x6ce   : > { %p2683_p11 = scmp.lt.s32.totalorder %s2681_s30, %s2677_s1 }
 0x6cf   : > { %p2679_p4 = pnand %p2678_p3, %p2857_p5 }
 0x6d0   : > { %p2684_p9 = por %p2683_p11, %p2682_p8 }
 0x6d1   : > { %p2680_p7 = pneg %p2679_p4 }
 0x6d3   : > { %p2685_p10 = pnand %p2684_p9, %p2680_p7 }
 0x6d5   : > { %2688 = shalt.err (!%p2685_p10)
}
 0x6d6   : > { %2565 = dma.vmem_to_hbm [thread:$0]  (%p2857_p5), %s2157_s27, 128, %s3165_s2, %s2140_s23  }
 0x6d7 PF: > { %p2577_p12 = scmp.ge.s32.totalorder %s2727_s21, 2  ;;  %s2175_s0 = sand.u32 1, %s2715_s18  }
 0x6d8   : > { %s2176_s22 = scalar_lea.sflag [#allocation4], %s2175_s0 }
 0x6d9   : > { %p2572_p13 = pnand %p2577_p12, %p2861_p6 }
 0x6db   : > { %p2573_p0 = pneg %p2572_p13 }
 0x6dd   : > { %2710 = dma.done.wait (%p2573_p0), %s2176_s22, 128  }
 0x6de   : > { %2712 = vsyncadd (%p2573_p0), %s2176_s22, 4294967168  ;;  %s3236_s16 = sld [smem:[#allocation8_spill]]  ;;  %p27_p1 = scmp.ge.s32.totalorder %s2844_s24, 4  }
 0x6df   : > { %s3237_s20 = sld [smem:[#allocation9_spill]]  ;;  %s3238_s18 = smov %s2719_s19 }
 0x6e0   : > { %s3240_s21 = smov %s2844_s24  ;;  %29 = sbr.rel (!%p27_p1) target bundleno = 9 (0x9), region = 137 }
 0x6e4   : > { %s3239_s19 = smov %s3236_s16 }
 0x6e5   :  { %2181 = vsyncpa [#allocation3], 1 }
 0x6e6   :  { %2183 = vsyncpa [#allocation3 + $0x1], 1 }
 0x6e7   :  { %2184 = vsyncpa [#allocation4], 1 }
 0x6e8   :  { %2186 = vsyncpa [#allocation4 + $0x1], 1 }

</bundles_post_ra>
